<compile_context>
chip_gen: v7x
topology: tpu7x:2x2x1
jax: 0.10.0
libtpu: 0.0.40
codegen_flags: <defaults>
</compile_context>

<pallas_src>
import jax
import jax.numpy as jnp
from jax.experimental import pallas as pl
from jax.experimental.pallas import tpu as pltpu

LANE = 128      # lane width (last dim)
SUBLANE = 8     # sublane width (second-to-last dim)


# --------------------------------------------------------------------------
# helpers: padding to TPU-friendly shapes
# --------------------------------------------------------------------------
def _round_up(x, m):
    return (x + m - 1) // m * m


def _pad2d(a, rows, cols):
    out = jnp.zeros((rows, cols), a.dtype)
    return out.at[: a.shape[0], : a.shape[1]].set(a)


def _pad1d(a, n):
    out = jnp.zeros((n,), a.dtype)
    return out.at[: a.shape[0]].set(a)


# --------------------------------------------------------------------------
# Fused Pallas kernel: both HeteroConv layers, all message types, ReLUs and
# the per-dst-type "add" aggregation, entirely in VMEM / registers.
# --------------------------------------------------------------------------
def _make_fused_kernel(node_types, message_types, dst_types, n_mt):
    def kernel(*refs):
        idx = 0
        x_refs = {}
        for nt in node_types:
            x_refs[nt] = refs[idx]; idx += 1
        adj_refs = {}
        for mt in message_types:
            adj_refs[mt] = refs[idx]; idx += 1
        w_ref = refs[idx]          # [2*n_mt*4, K, K]   stacked weight matrices
        b_ref = refs[idx + 1]      # [2*n_mt*3, 1, K]   stacked bias rows
        idx += 2
        out_refs = {}
        for nt in dst_types:
            out_refs[nt] = refs[idx]; idx += 1

        # Load adjacencies and input features once (already VMEM resident).
        adj = {mt: adj_refs[mt][...] for mt in message_types}
        x = {nt: x_refs[nt][...] for nt in node_types}

        for layer in range(2):
            # relu(dropout(x)): dropout is identity (inference); ReLU computed
            # once per node type and reused by every message type.
            rx = {nt: jnp.maximum(v, 0.0) for nt, v in x.items()}
            out = {}
            for m, mt in enumerate(message_types):
                s_type, _, d_type = mt
                wbase = (layer * n_mt + m) * 4
                bbase = (layer * n_mt + m) * 3
                wn = w_ref[wbase + 0]      # lin_neigh weight  [K, K]
                ws = w_ref[wbase + 1]      # lin_self  weight  [K, K]
                wun = w_ref[wbase + 2]     # lin_update (neigh half) [K, K]
                wus = w_ref[wbase + 3]     # lin_update (self  half) [K, K]
                bn = b_ref[bbase + 0]      # [1, K]
                bs = b_ref[bbase + 1]      # [1, K]
                bu = b_ref[bbase + 2]      # [1, K]

                # scatter-add neighbor aggregation as dense adjacency matmul
                agg = jnp.dot(adj[mt], rx[s_type],
                              preferred_element_type=jnp.float32)
                h_n = jnp.dot(agg, wn, preferred_element_type=jnp.float32) + bn
                h_s = jnp.dot(rx[d_type], ws,
                              preferred_element_type=jnp.float32) + bs
                # lin_update(concat(h_n, h_s)) == h_n @ Wu_n + h_s @ Wu_s + bu
                y = (jnp.dot(h_n, wun, preferred_element_type=jnp.float32)
                     + jnp.dot(h_s, wus, preferred_element_type=jnp.float32)
                     + bu)
                # HeteroConv(aggr="add") across message types, done in-kernel
                out[d_type] = y if d_type not in out else out[d_type] + y
            x = out

        for nt in dst_types:
            out_refs[nt][...] = x[nt]

    return kernel


def hetero_net_forward(node_feature, adjs, params1, params2,
                       node_types, message_types, hidden):
    """Full HeteroNet forward (both HeteroConv layers) in one pallas_call."""
    num_nodes = {nt: node_feature[nt].shape[0] for nt in node_types}
    feat_dims = {nt: node_feature[nt].shape[1] for nt in node_types}
    n_mt = len(message_types)
    dst_types = [nt for nt in node_types
                 if any(mt[2] == nt for mt in message_types)]

    # Uniform lane-dense padded width for features / hidden (here: 128).
    kdim = _round_up(max([hidden] + list(feat_dims.values())), LANE)
    n_pad = {nt: _round_up(num_nodes[nt], SUBLANE) for nt in node_types}

    # Padded, lane-dense inputs (exact zero padding -> numerics unchanged).
    x_pad = [_pad2d(node_feature[nt], n_pad[nt], kdim) for nt in node_types]
    adj_pad = [_pad2d(adjs[mt], n_pad[mt[2]], n_pad[mt[0]])
               for mt in message_types]

    # Pack all weights / biases into two stacked VMEM slabs.
    w_list, b_list = [], []
    for params in (params1, params2):
        for mt in message_types:
            p = params[mt]
            w_list += [_pad2d(p["wn_t"], kdim, kdim),
                       _pad2d(p["ws_t"], kdim, kdim),
                       _pad2d(p["wu_n_t"], kdim, kdim),
                       _pad2d(p["wu_s_t"], kdim, kdim)]
            b_list += [_pad1d(p["bn"], kdim),
                       _pad1d(p["bs"], kdim),
                       _pad1d(p["bu"], kdim)]
    w_stack = jnp.stack(w_list)                 # [2*n_mt*4, kdim, kdim]
    b_stack = jnp.stack(b_list)[:, None, :]     # [2*n_mt*3, 1, kdim]

    args = tuple(x_pad) + tuple(adj_pad) + (w_stack, b_stack)

    kernel = _make_fused_kernel(tuple(node_types), tuple(message_types),
                                tuple(dst_types), n_mt)

    vmem_spec = pl.BlockSpec(memory_space=pltpu.MemorySpace.VMEM)
    outs = pl.pallas_call(
        kernel,
        out_shape=tuple(jax.ShapeDtypeStruct((n_pad[nt], kdim), jnp.float32)
                        for nt in dst_types),
        in_specs=[vmem_spec] * len(args),
        out_specs=tuple(vmem_spec for _ in dst_types),
    )(*args)
    if not isinstance(outs, (tuple, list)):
        outs = (outs,)
    # Slice back to the logical (unpadded) shapes.
    return {nt: outs[i][: num_nodes[nt], :hidden]
            for i, nt in enumerate(dst_types)}


# --------------------------------------------------------------------------
# Plain-JAX glue: parameters, dense adjacency construction, reference model
# --------------------------------------------------------------------------
def _init_linear(key, fan_in, fan_out):
    """Deterministic PyTorch-Linear-style init (uniform +/- 1/sqrt(fan_in))."""
    k_w, k_b = jax.random.split(key)
    bound = 1.0 / jnp.sqrt(jnp.float32(fan_in))
    w = jax.random.uniform(k_w, (fan_out, fan_in), jnp.float32, -bound, bound)
    b = jax.random.uniform(k_b, (fan_out,), jnp.float32, -bound, bound)
    return w, b


def init_sage_params(key, in_neigh, in_self, hidden):
    k0, k1, k2 = jax.random.split(key, 3)
    wn, bn = _init_linear(k0, in_neigh, hidden)        # lin_neigh: (H, in_neigh)
    ws, bs = _init_linear(k1, in_self, hidden)         # lin_self:  (H, in_self)
    wu, bu = _init_linear(k2, 2 * hidden, hidden)      # lin_update:(H, 2H)
    return {
        "wn_t": wn.T, "bn": bn,
        "ws_t": ws.T, "bs": bs,
        "wu_n_t": wu[:, :hidden].T, "wu_s_t": wu[:, hidden:].T, "bu": bu,
    }


def dense_adjacency(edge_index, n_dst, n_src):
    """edge_index[0]=source(neigh), edge_index[1]=target(self); multi-edges counted."""
    src, dst = edge_index[0], edge_index[1]
    adj = jnp.zeros((n_dst, n_src), jnp.float32)
    return adj.at[dst, src].add(1.0)


# pure-JAX reference (for a correctness check of the fused kernel)
def _sage_ref(adj, xn, xs, p):
    xn = jnp.maximum(xn, 0.0)
    xs = jnp.maximum(xs, 0.0)
    agg = adj @ xn
    h_n = agg @ p["wn_t"] + p["bn"]
    h_s = xs @ p["ws_t"] + p["bs"]
    return h_n @ p["wu_n_t"] + h_s @ p["wu_s_t"] + p["bu"]


def _forward_ref(node_feature, adjs, params_list, message_types):
    x = node_feature
    for params in params_list:
        out = {}
        for mt in message_types:
            s_type, _, d_type = mt
            y = _sage_ref(adjs[mt], x[s_type], x[d_type], params[mt])
            out[d_type] = y if d_type not in out else out[d_type] + y
        x = out
    return x


if __name__ == "__main__":
    key = jax.random.PRNGKey(0)
    hidden = 32

    # Small synthetic heterogeneous graph: two node types, three message types.
    num_nodes = {"n0": 24, "n1": 16}
    feat_dims = {"n0": 32, "n1": 48}
    node_types = ["n0", "n1"]
    message_types = [("n0", "e0", "n1"), ("n1", "e1", "n0"), ("n0", "e2", "n0")]
    num_edges = 64

    # node features
    node_feature = {}
    for nt in node_types:
        key, sub = jax.random.split(key)
        node_feature[nt] = jax.random.normal(
            sub, (num_nodes[nt], feat_dims[nt]), jnp.float32)

    # edge indices and dense adjacencies per message type
    edge_index, adjs = {}, {}
    for mt in message_types:
        s_type, _, d_type = mt
        key, ks, kd = jax.random.split(key, 3)
        src = jax.random.randint(ks, (num_edges,), 0, num_nodes[s_type])
        dst = jax.random.randint(kd, (num_edges,), 0, num_nodes[d_type])
        edge_index[mt] = jnp.stack([src, dst])                       # [2, E]
        adjs[mt] = dense_adjacency(edge_index[mt],
                                   num_nodes[d_type], num_nodes[s_type])

    # conv1 params: (feat_neigh, feat_self) -> hidden ; conv2: hidden -> hidden
    params1, params2 = {}, {}
    for mt in message_types:
        s_type, _, d_type = mt
        key, k1, k2 = jax.random.split(key, 3)
        params1[mt] = init_sage_params(k1, feat_dims[s_type],
                                       feat_dims[d_type], hidden)
        params2[mt] = init_sage_params(k2, hidden, hidden, hidden)

    out = hetero_net_forward(node_feature, adjs, params1, params2,
                             node_types, message_types, hidden)
    out = jax.tree_util.tree_map(jax.block_until_ready, out)

    ref = _forward_ref(node_feature, adjs, [params1, params2], message_types)
    for nt in out:
        assert out[nt].shape == (num_nodes[nt], hidden)
        assert jnp.allclose(out[nt], ref[nt], atol=1e-4, rtol=1e-4), \
            f"mismatch on {nt}"

    print("KERNEL_OK")
</pallas_src>

<mosaic_0001>
module attributes {stable_mosaic.version = 11 : i64} {
  func.func @kernel(%arg0: memref<24x128xf32, #tpu.memory_space<vmem>>, %arg1: memref<16x128xf32, #tpu.memory_space<vmem>>, %arg2: memref<16x24xf32, #tpu.memory_space<vmem>>, %arg3: memref<24x16xf32, #tpu.memory_space<vmem>>, %arg4: memref<24x24xf32, #tpu.memory_space<vmem>>, %arg5: memref<24x128x128xf32, #tpu.memory_space<vmem>>, %arg6: memref<18x1x128xf32, #tpu.memory_space<vmem>>, %arg7: memref<24x128xf32, #tpu.memory_space<vmem>>, %arg8: memref<16x128xf32, #tpu.memory_space<vmem>>) attributes {dimension_semantics = [], scalar_prefetch = 0 : i64, scratch_operands = 0 : i64, tpu.core_type = #tpu.core_type<tc>} {
    %c0 = arith.constant 0 : index
    %c0_0 = arith.constant 0 : index
    %0 = vector.load %arg2[%c0, %c0_0] : memref<16x24xf32, #tpu.memory_space<vmem>>, vector<16x24xf32>
    %c0_1 = arith.constant 0 : index
    %c0_2 = arith.constant 0 : index
    %1 = vector.load %arg3[%c0_1, %c0_2] : memref<24x16xf32, #tpu.memory_space<vmem>>, vector<24x16xf32>
    %c0_3 = arith.constant 0 : index
    %c0_4 = arith.constant 0 : index
    %2 = vector.load %arg4[%c0_3, %c0_4] : memref<24x24xf32, #tpu.memory_space<vmem>>, vector<24x24xf32>
    %c0_5 = arith.constant 0 : index
    %c0_6 = arith.constant 0 : index
    %3 = vector.load %arg0[%c0_5, %c0_6] : memref<24x128xf32, #tpu.memory_space<vmem>>, vector<24x128xf32>
    %c0_7 = arith.constant 0 : index
    %c0_8 = arith.constant 0 : index
    %4 = vector.load %arg1[%c0_7, %c0_8] : memref<16x128xf32, #tpu.memory_space<vmem>>, vector<16x128xf32>
    %cst = arith.constant 0.000000e+00 : f32
    %5 = vector.broadcast %cst : f32 to vector<24x128xf32>
    %6 = arith.maximumf %3, %5 : vector<24x128xf32>
    %cst_9 = arith.constant 0.000000e+00 : f32
    %7 = vector.broadcast %cst_9 : f32 to vector<16x128xf32>
    %8 = arith.maximumf %4, %7 : vector<16x128xf32>
    %c0_10 = arith.constant 0 : index
    %c0_11 = arith.constant 0 : index
    %c0_12 = arith.constant 0 : index
    %9 = vector.load %arg5[%c0_10, %c0_11, %c0_12] : memref<24x128x128xf32, #tpu.memory_space<vmem>>, vector<1x128x128xf32>
    %10 = vector.shape_cast %9 : vector<1x128x128xf32> to vector<128x128xf32>
    %c1 = arith.constant 1 : index
    %c0_13 = arith.constant 0 : index
    %c0_14 = arith.constant 0 : index
    %11 = vector.load %arg5[%c1, %c0_13, %c0_14] : memref<24x128x128xf32, #tpu.memory_space<vmem>>, vector<1x128x128xf32>
    %12 = vector.shape_cast %11 : vector<1x128x128xf32> to vector<128x128xf32>
    %c2 = arith.constant 2 : index
    %c0_15 = arith.constant 0 : index
    %c0_16 = arith.constant 0 : index
    %13 = vector.load %arg5[%c2, %c0_15, %c0_16] : memref<24x128x128xf32, #tpu.memory_space<vmem>>, vector<1x128x128xf32>
    %14 = vector.shape_cast %13 : vector<1x128x128xf32> to vector<128x128xf32>
    %c3 = arith.constant 3 : index
    %c0_17 = arith.constant 0 : index
    %c0_18 = arith.constant 0 : index
    %15 = vector.load %arg5[%c3, %c0_17, %c0_18] : memref<24x128x128xf32, #tpu.memory_space<vmem>>, vector<1x128x128xf32>
    %16 = vector.shape_cast %15 : vector<1x128x128xf32> to vector<128x128xf32>
    %c0_19 = arith.constant 0 : index
    %c0_20 = arith.constant 0 : index
    %c0_21 = arith.constant 0 : index
    %17 = vector.load %arg6[%c0_19, %c0_20, %c0_21] : memref<18x1x128xf32, #tpu.memory_space<vmem>>, vector<1x1x128xf32>
    %18 = vector.shape_cast %17 : vector<1x1x128xf32> to vector<1x128xf32>
    %c1_22 = arith.constant 1 : index
    %c0_23 = arith.constant 0 : index
    %c0_24 = arith.constant 0 : index
    %19 = vector.load %arg6[%c1_22, %c0_23, %c0_24] : memref<18x1x128xf32, #tpu.memory_space<vmem>>, vector<1x1x128xf32>
    %20 = vector.shape_cast %19 : vector<1x1x128xf32> to vector<1x128xf32>
    %c2_25 = arith.constant 2 : index
    %c0_26 = arith.constant 0 : index
    %c0_27 = arith.constant 0 : index
    %21 = vector.load %arg6[%c2_25, %c0_26, %c0_27] : memref<18x1x128xf32, #tpu.memory_space<vmem>>, vector<1x1x128xf32>
    %22 = vector.shape_cast %21 : vector<1x1x128xf32> to vector<1x128xf32>
    %cst_28 = arith.constant dense<0.000000e+00> : vector<16x128xf32>
    %23 = tpu.matmul %0, %6, %cst_28 {dimension_numbers = #tpu.dot_dimension_numbers<[1], [0], [0], [1], [0, 0, 1, 1], [], []>} : vector<16x24xf32>, vector<24x128xf32>, vector<16x128xf32> -> vector<16x128xf32>
    %cst_29 = arith.constant dense<0.000000e+00> : vector<16x128xf32>
    %24 = tpu.matmul %23, %10, %cst_29 {dimension_numbers = #tpu.dot_dimension_numbers<[1], [0], [0], [1], [0, 0, 1, 1], [], []>} : vector<16x128xf32>, vector<128x128xf32>, vector<16x128xf32> -> vector<16x128xf32>
    %25 = vector.broadcast %18 : vector<1x128xf32> to vector<16x128xf32>
    %26 = arith.addf %24, %25 : vector<16x128xf32>
    %cst_30 = arith.constant dense<0.000000e+00> : vector<16x128xf32>
    %27 = tpu.matmul %8, %12, %cst_30 {dimension_numbers = #tpu.dot_dimension_numbers<[1], [0], [0], [1], [0, 0, 1, 1], [], []>} : vector<16x128xf32>, vector<128x128xf32>, vector<16x128xf32> -> vector<16x128xf32>
    %28 = vector.broadcast %20 : vector<1x128xf32> to vector<16x128xf32>
    %29 = arith.addf %27, %28 : vector<16x128xf32>
    %cst_31 = arith.constant dense<0.000000e+00> : vector<16x128xf32>
    %30 = tpu.matmul %26, %14, %cst_31 {dimension_numbers = #tpu.dot_dimension_numbers<[1], [0], [0], [1], [0, 0, 1, 1], [], []>} : vector<16x128xf32>, vector<128x128xf32>, vector<16x128xf32> -> vector<16x128xf32>
    %cst_32 = arith.constant dense<0.000000e+00> : vector<16x128xf32>
    %31 = tpu.matmul %29, %16, %cst_32 {dimension_numbers = #tpu.dot_dimension_numbers<[1], [0], [0], [1], [0, 0, 1, 1], [], []>} : vector<16x128xf32>, vector<128x128xf32>, vector<16x128xf32> -> vector<16x128xf32>
    %32 = arith.addf %30, %31 : vector<16x128xf32>
    %33 = vector.broadcast %22 : vector<1x128xf32> to vector<16x128xf32>
    %34 = arith.addf %32, %33 : vector<16x128xf32>
    %c4 = arith.constant 4 : index
    %c0_33 = arith.constant 0 : index
    %c0_34 = arith.constant 0 : index
    %35 = vector.load %arg5[%c4, %c0_33, %c0_34] : memref<24x128x128xf32, #tpu.memory_space<vmem>>, vector<1x128x128xf32>
    %36 = vector.shape_cast %35 : vector<1x128x128xf32> to vector<128x128xf32>
    %c5 = arith.constant 5 : index
    %c0_35 = arith.constant 0 : index
    %c0_36 = arith.constant 0 : index
    %37 = vector.load %arg5[%c5, %c0_35, %c0_36] : memref<24x128x128xf32, #tpu.memory_space<vmem>>, vector<1x128x128xf32>
    %38 = vector.shape_cast %37 : vector<1x128x128xf32> to vector<128x128xf32>
    %c6 = arith.constant 6 : index
    %c0_37 = arith.constant 0 : index
    %c0_38 = arith.constant 0 : index
    %39 = vector.load %arg5[%c6, %c0_37, %c0_38] : memref<24x128x128xf32, #tpu.memory_space<vmem>>, vector<1x128x128xf32>
    %40 = vector.shape_cast %39 : vector<1x128x128xf32> to vector<128x128xf32>
    %c7 = arith.constant 7 : index
    %c0_39 = arith.constant 0 : index
    %c0_40 = arith.constant 0 : index
    %41 = vector.load %arg5[%c7, %c0_39, %c0_40] : memref<24x128x128xf32, #tpu.memory_space<vmem>>, vector<1x128x128xf32>
    %42 = vector.shape_cast %41 : vector<1x128x128xf32> to vector<128x128xf32>
    %c3_41 = arith.constant 3 : index
    %c0_42 = arith.constant 0 : index
    %c0_43 = arith.constant 0 : index
    %43 = vector.load %arg6[%c3_41, %c0_42, %c0_43] : memref<18x1x128xf32, #tpu.memory_space<vmem>>, vector<1x1x128xf32>
    %44 = vector.shape_cast %43 : vector<1x1x128xf32> to vector<1x128xf32>
    %c4_44 = arith.constant 4 : index
    %c0_45 = arith.constant 0 : index
    %c0_46 = arith.constant 0 : index
    %45 = vector.load %arg6[%c4_44, %c0_45, %c0_46] : memref<18x1x128xf32, #tpu.memory_space<vmem>>, vector<1x1x128xf32>
    %46 = vector.shape_cast %45 : vector<1x1x128xf32> to vector<1x128xf32>
    %c5_47 = arith.constant 5 : index
    %c0_48 = arith.constant 0 : index
    %c0_49 = arith.constant 0 : index
    %47 = vector.load %arg6[%c5_47, %c0_48, %c0_49] : memref<18x1x128xf32, #tpu.memory_space<vmem>>, vector<1x1x128xf32>
    %48 = vector.shape_cast %47 : vector<1x1x128xf32> to vector<1x128xf32>
    %cst_50 = arith.constant dense<0.000000e+00> : vector<24x128xf32>
    %49 = tpu.matmul %1, %8, %cst_50 {dimension_numbers = #tpu.dot_dimension_numbers<[1], [0], [0], [1], [0, 0, 1, 1], [], []>} : vector<24x16xf32>, vector<16x128xf32>, vector<24x128xf32> -> vector<24x128xf32>
    %cst_51 = arith.constant dense<0.000000e+00> : vector<24x128xf32>
    %50 = tpu.matmul %49, %36, %cst_51 {dimension_numbers = #tpu.dot_dimension_numbers<[1], [0], [0], [1], [0, 0, 1, 1], [], []>} : vector<24x128xf32>, vector<128x128xf32>, vector<24x128xf32> -> vector<24x128xf32>
    %51 = vector.broadcast %44 : vector<1x128xf32> to vector<24x128xf32>
    %52 = arith.addf %50, %51 : vector<24x128xf32>
    %cst_52 = arith.constant dense<0.000000e+00> : vector<24x128xf32>
    %53 = tpu.matmul %6, %38, %cst_52 {dimension_numbers = #tpu.dot_dimension_numbers<[1], [0], [0], [1], [0, 0, 1, 1], [], []>} : vector<24x128xf32>, vector<128x128xf32>, vector<24x128xf32> -> vector<24x128xf32>
    %54 = vector.broadcast %46 : vector<1x128xf32> to vector<24x128xf32>
    %55 = arith.addf %53, %54 : vector<24x128xf32>
    %cst_53 = arith.constant dense<0.000000e+00> : vector<24x128xf32>
    %56 = tpu.matmul %52, %40, %cst_53 {dimension_numbers = #tpu.dot_dimension_numbers<[1], [0], [0], [1], [0, 0, 1, 1], [], []>} : vector<24x128xf32>, vector<128x128xf32>, vector<24x128xf32> -> vector<24x128xf32>
    %cst_54 = arith.constant dense<0.000000e+00> : vector<24x128xf32>
    %57 = tpu.matmul %55, %42, %cst_54 {dimension_numbers = #tpu.dot_dimension_numbers<[1], [0], [0], [1], [0, 0, 1, 1], [], []>} : vector<24x128xf32>, vector<128x128xf32>, vector<24x128xf32> -> vector<24x128xf32>
    %58 = arith.addf %56, %57 : vector<24x128xf32>
    %59 = vector.broadcast %48 : vector<1x128xf32> to vector<24x128xf32>
    %60 = arith.addf %58, %59 : vector<24x128xf32>
    %c8 = arith.constant 8 : index
    %c0_55 = arith.constant 0 : index
    %c0_56 = arith.constant 0 : index
    %61 = vector.load %arg5[%c8, %c0_55, %c0_56] : memref<24x128x128xf32, #tpu.memory_space<vmem>>, vector<1x128x128xf32>
    %62 = vector.shape_cast %61 : vector<1x128x128xf32> to vector<128x128xf32>
    %c9 = arith.constant 9 : index
    %c0_57 = arith.constant 0 : index
    %c0_58 = arith.constant 0 : index
    %63 = vector.load %arg5[%c9, %c0_57, %c0_58] : memref<24x128x128xf32, #tpu.memory_space<vmem>>, vector<1x128x128xf32>
    %64 = vector.shape_cast %63 : vector<1x128x128xf32> to vector<128x128xf32>
    %c10 = arith.constant 10 : index
    %c0_59 = arith.constant 0 : index
    %c0_60 = arith.constant 0 : index
    %65 = vector.load %arg5[%c10, %c0_59, %c0_60] : memref<24x128x128xf32, #tpu.memory_space<vmem>>, vector<1x128x128xf32>
    %66 = vector.shape_cast %65 : vector<1x128x128xf32> to vector<128x128xf32>
    %c11 = arith.constant 11 : index
    %c0_61 = arith.constant 0 : index
    %c0_62 = arith.constant 0 : index
    %67 = vector.load %arg5[%c11, %c0_61, %c0_62] : memref<24x128x128xf32, #tpu.memory_space<vmem>>, vector<1x128x128xf32>
    %68 = vector.shape_cast %67 : vector<1x128x128xf32> to vector<128x128xf32>
    %c6_63 = arith.constant 6 : index
    %c0_64 = arith.constant 0 : index
    %c0_65 = arith.constant 0 : index
    %69 = vector.load %arg6[%c6_63, %c0_64, %c0_65] : memref<18x1x128xf32, #tpu.memory_space<vmem>>, vector<1x1x128xf32>
    %70 = vector.shape_cast %69 : vector<1x1x128xf32> to vector<1x128xf32>
    %c7_66 = arith.constant 7 : index
    %c0_67 = arith.constant 0 : index
    %c0_68 = arith.constant 0 : index
    %71 = vector.load %arg6[%c7_66, %c0_67, %c0_68] : memref<18x1x128xf32, #tpu.memory_space<vmem>>, vector<1x1x128xf32>
    %72 = vector.shape_cast %71 : vector<1x1x128xf32> to vector<1x128xf32>
    %c8_69 = arith.constant 8 : index
    %c0_70 = arith.constant 0 : index
    %c0_71 = arith.constant 0 : index
    %73 = vector.load %arg6[%c8_69, %c0_70, %c0_71] : memref<18x1x128xf32, #tpu.memory_space<vmem>>, vector<1x1x128xf32>
    %74 = vector.shape_cast %73 : vector<1x1x128xf32> to vector<1x128xf32>
    %cst_72 = arith.constant dense<0.000000e+00> : vector<24x128xf32>
    %75 = tpu.matmul %2, %6, %cst_72 {dimension_numbers = #tpu.dot_dimension_numbers<[1], [0], [0], [1], [0, 0, 1, 1], [], []>} : vector<24x24xf32>, vector<24x128xf32>, vector<24x128xf32> -> vector<24x128xf32>
    %cst_73 = arith.constant dense<0.000000e+00> : vector<24x128xf32>
    %76 = tpu.matmul %75, %62, %cst_73 {dimension_numbers = #tpu.dot_dimension_numbers<[1], [0], [0], [1], [0, 0, 1, 1], [], []>} : vector<24x128xf32>, vector<128x128xf32>, vector<24x128xf32> -> vector<24x128xf32>
    %77 = vector.broadcast %70 : vector<1x128xf32> to vector<24x128xf32>
    %78 = arith.addf %76, %77 : vector<24x128xf32>
    %cst_74 = arith.constant dense<0.000000e+00> : vector<24x128xf32>
    %79 = tpu.matmul %6, %64, %cst_74 {dimension_numbers = #tpu.dot_dimension_numbers<[1], [0], [0], [1], [0, 0, 1, 1], [], []>} : vector<24x128xf32>, vector<128x128xf32>, vector<24x128xf32> -> vector<24x128xf32>
    %80 = vector.broadcast %72 : vector<1x128xf32> to vector<24x128xf32>
    %81 = arith.addf %79, %80 : vector<24x128xf32>
    %cst_75 = arith.constant dense<0.000000e+00> : vector<24x128xf32>
    %82 = tpu.matmul %78, %66, %cst_75 {dimension_numbers = #tpu.dot_dimension_numbers<[1], [0], [0], [1], [0, 0, 1, 1], [], []>} : vector<24x128xf32>, vector<128x128xf32>, vector<24x128xf32> -> vector<24x128xf32>
    %cst_76 = arith.constant dense<0.000000e+00> : vector<24x128xf32>
    %83 = tpu.matmul %81, %68, %cst_76 {dimension_numbers = #tpu.dot_dimension_numbers<[1], [0], [0], [1], [0, 0, 1, 1], [], []>} : vector<24x128xf32>, vector<128x128xf32>, vector<24x128xf32> -> vector<24x128xf32>
    %84 = arith.addf %82, %83 : vector<24x128xf32>
    %85 = vector.broadcast %74 : vector<1x128xf32> to vector<24x128xf32>
    %86 = arith.addf %84, %85 : vector<24x128xf32>
    %87 = arith.addf %60, %86 : vector<24x128xf32>
    %cst_77 = arith.constant 0.000000e+00 : f32
    %88 = vector.broadcast %cst_77 : f32 to vector<16x128xf32>
    %89 = arith.maximumf %34, %88 : vector<16x128xf32>
    %cst_78 = arith.constant 0.000000e+00 : f32
    %90 = vector.broadcast %cst_78 : f32 to vector<24x128xf32>
    %91 = arith.maximumf %87, %90 : vector<24x128xf32>
    %c12 = arith.constant 12 : index
    %c0_79 = arith.constant 0 : index
    %c0_80 = arith.constant 0 : index
    %92 = vector.load %arg5[%c12, %c0_79, %c0_80] : memref<24x128x128xf32, #tpu.memory_space<vmem>>, vector<1x128x128xf32>
    %93 = vector.shape_cast %92 : vector<1x128x128xf32> to vector<128x128xf32>
    %c13 = arith.constant 13 : index
    %c0_81 = arith.constant 0 : index
    %c0_82 = arith.constant 0 : index
    %94 = vector.load %arg5[%c13, %c0_81, %c0_82] : memref<24x128x128xf32, #tpu.memory_space<vmem>>, vector<1x128x128xf32>
    %95 = vector.shape_cast %94 : vector<1x128x128xf32> to vector<128x128xf32>
    %c14 = arith.constant 14 : index
    %c0_83 = arith.constant 0 : index
    %c0_84 = arith.constant 0 : index
    %96 = vector.load %arg5[%c14, %c0_83, %c0_84] : memref<24x128x128xf32, #tpu.memory_space<vmem>>, vector<1x128x128xf32>
    %97 = vector.shape_cast %96 : vector<1x128x128xf32> to vector<128x128xf32>
    %c15 = arith.constant 15 : index
    %c0_85 = arith.constant 0 : index
    %c0_86 = arith.constant 0 : index
    %98 = vector.load %arg5[%c15, %c0_85, %c0_86] : memref<24x128x128xf32, #tpu.memory_space<vmem>>, vector<1x128x128xf32>
    %99 = vector.shape_cast %98 : vector<1x128x128xf32> to vector<128x128xf32>
    %c9_87 = arith.constant 9 : index
    %c0_88 = arith.constant 0 : index
    %c0_89 = arith.constant 0 : index
    %100 = vector.load %arg6[%c9_87, %c0_88, %c0_89] : memref<18x1x128xf32, #tpu.memory_space<vmem>>, vector<1x1x128xf32>
    %101 = vector.shape_cast %100 : vector<1x1x128xf32> to vector<1x128xf32>
    %c10_90 = arith.constant 10 : index
    %c0_91 = arith.constant 0 : index
    %c0_92 = arith.constant 0 : index
    %102 = vector.load %arg6[%c10_90, %c0_91, %c0_92] : memref<18x1x128xf32, #tpu.memory_space<vmem>>, vector<1x1x128xf32>
    %103 = vector.shape_cast %102 : vector<1x1x128xf32> to vector<1x128xf32>
    %c11_93 = arith.constant 11 : index
    %c0_94 = arith.constant 0 : index
    %c0_95 = arith.constant 0 : index
    %104 = vector.load %arg6[%c11_93, %c0_94, %c0_95] : memref<18x1x128xf32, #tpu.memory_space<vmem>>, vector<1x1x128xf32>
    %105 = vector.shape_cast %104 : vector<1x1x128xf32> to vector<1x128xf32>
    %cst_96 = arith.constant dense<0.000000e+00> : vector<16x128xf32>
    %106 = tpu.matmul %0, %91, %cst_96 {dimension_numbers = #tpu.dot_dimension_numbers<[1], [0], [0], [1], [0, 0, 1, 1], [], []>} : vector<16x24xf32>, vector<24x128xf32>, vector<16x128xf32> -> vector<16x128xf32>
    %cst_97 = arith.constant dense<0.000000e+00> : vector<16x128xf32>
    %107 = tpu.matmul %106, %93, %cst_97 {dimension_numbers = #tpu.dot_dimension_numbers<[1], [0], [0], [1], [0, 0, 1, 1], [], []>} : vector<16x128xf32>, vector<128x128xf32>, vector<16x128xf32> -> vector<16x128xf32>
    %108 = vector.broadcast %101 : vector<1x128xf32> to vector<16x128xf32>
    %109 = arith.addf %107, %108 : vector<16x128xf32>
    %cst_98 = arith.constant dense<0.000000e+00> : vector<16x128xf32>
    %110 = tpu.matmul %89, %95, %cst_98 {dimension_numbers = #tpu.dot_dimension_numbers<[1], [0], [0], [1], [0, 0, 1, 1], [], []>} : vector<16x128xf32>, vector<128x128xf32>, vector<16x128xf32> -> vector<16x128xf32>
    %111 = vector.broadcast %103 : vector<1x128xf32> to vector<16x128xf32>
    %112 = arith.addf %110, %111 : vector<16x128xf32>
    %cst_99 = arith.constant dense<0.000000e+00> : vector<16x128xf32>
    %113 = tpu.matmul %109, %97, %cst_99 {dimension_numbers = #tpu.dot_dimension_numbers<[1], [0], [0], [1], [0, 0, 1, 1], [], []>} : vector<16x128xf32>, vector<128x128xf32>, vector<16x128xf32> -> vector<16x128xf32>
    %cst_100 = arith.constant dense<0.000000e+00> : vector<16x128xf32>
    %114 = tpu.matmul %112, %99, %cst_100 {dimension_numbers = #tpu.dot_dimension_numbers<[1], [0], [0], [1], [0, 0, 1, 1], [], []>} : vector<16x128xf32>, vector<128x128xf32>, vector<16x128xf32> -> vector<16x128xf32>
    %115 = arith.addf %113, %114 : vector<16x128xf32>
    %116 = vector.broadcast %105 : vector<1x128xf32> to vector<16x128xf32>
    %117 = arith.addf %115, %116 : vector<16x128xf32>
    %c16 = arith.constant 16 : index
    %c0_101 = arith.constant 0 : index
    %c0_102 = arith.constant 0 : index
    %118 = vector.load %arg5[%c16, %c0_101, %c0_102] : memref<24x128x128xf32, #tpu.memory_space<vmem>>, vector<1x128x128xf32>
    %119 = vector.shape_cast %118 : vector<1x128x128xf32> to vector<128x128xf32>
    %c17 = arith.constant 17 : index
    %c0_103 = arith.constant 0 : index
    %c0_104 = arith.constant 0 : index
    %120 = vector.load %arg5[%c17, %c0_103, %c0_104] : memref<24x128x128xf32, #tpu.memory_space<vmem>>, vector<1x128x128xf32>
    %121 = vector.shape_cast %120 : vector<1x128x128xf32> to vector<128x128xf32>
    %c18 = arith.constant 18 : index
    %c0_105 = arith.constant 0 : index
    %c0_106 = arith.constant 0 : index
    %122 = vector.load %arg5[%c18, %c0_105, %c0_106] : memref<24x128x128xf32, #tpu.memory_space<vmem>>, vector<1x128x128xf32>
    %123 = vector.shape_cast %122 : vector<1x128x128xf32> to vector<128x128xf32>
    %c19 = arith.constant 19 : index
    %c0_107 = arith.constant 0 : index
    %c0_108 = arith.constant 0 : index
    %124 = vector.load %arg5[%c19, %c0_107, %c0_108] : memref<24x128x128xf32, #tpu.memory_space<vmem>>, vector<1x128x128xf32>
    %125 = vector.shape_cast %124 : vector<1x128x128xf32> to vector<128x128xf32>
    %c12_109 = arith.constant 12 : index
    %c0_110 = arith.constant 0 : index
    %c0_111 = arith.constant 0 : index
    %126 = vector.load %arg6[%c12_109, %c0_110, %c0_111] : memref<18x1x128xf32, #tpu.memory_space<vmem>>, vector<1x1x128xf32>
    %127 = vector.shape_cast %126 : vector<1x1x128xf32> to vector<1x128xf32>
    %c13_112 = arith.constant 13 : index
    %c0_113 = arith.constant 0 : index
    %c0_114 = arith.constant 0 : index
    %128 = vector.load %arg6[%c13_112, %c0_113, %c0_114] : memref<18x1x128xf32, #tpu.memory_space<vmem>>, vector<1x1x128xf32>
    %129 = vector.shape_cast %128 : vector<1x1x128xf32> to vector<1x128xf32>
    %c14_115 = arith.constant 14 : index
    %c0_116 = arith.constant 0 : index
    %c0_117 = arith.constant 0 : index
    %130 = vector.load %arg6[%c14_115, %c0_116, %c0_117] : memref<18x1x128xf32, #tpu.memory_space<vmem>>, vector<1x1x128xf32>
    %131 = vector.shape_cast %130 : vector<1x1x128xf32> to vector<1x128xf32>
    %cst_118 = arith.constant dense<0.000000e+00> : vector<24x128xf32>
    %132 = tpu.matmul %1, %89, %cst_118 {dimension_numbers = #tpu.dot_dimension_numbers<[1], [0], [0], [1], [0, 0, 1, 1], [], []>} : vector<24x16xf32>, vector<16x128xf32>, vector<24x128xf32> -> vector<24x128xf32>
    %cst_119 = arith.constant dense<0.000000e+00> : vector<24x128xf32>
    %133 = tpu.matmul %132, %119, %cst_119 {dimension_numbers = #tpu.dot_dimension_numbers<[1], [0], [0], [1], [0, 0, 1, 1], [], []>} : vector<24x128xf32>, vector<128x128xf32>, vector<24x128xf32> -> vector<24x128xf32>
    %134 = vector.broadcast %127 : vector<1x128xf32> to vector<24x128xf32>
    %135 = arith.addf %133, %134 : vector<24x128xf32>
    %cst_120 = arith.constant dense<0.000000e+00> : vector<24x128xf32>
    %136 = tpu.matmul %91, %121, %cst_120 {dimension_numbers = #tpu.dot_dimension_numbers<[1], [0], [0], [1], [0, 0, 1, 1], [], []>} : vector<24x128xf32>, vector<128x128xf32>, vector<24x128xf32> -> vector<24x128xf32>
    %137 = vector.broadcast %129 : vector<1x128xf32> to vector<24x128xf32>
    %138 = arith.addf %136, %137 : vector<24x128xf32>
    %cst_121 = arith.constant dense<0.000000e+00> : vector<24x128xf32>
    %139 = tpu.matmul %135, %123, %cst_121 {dimension_numbers = #tpu.dot_dimension_numbers<[1], [0], [0], [1], [0, 0, 1, 1], [], []>} : vector<24x128xf32>, vector<128x128xf32>, vector<24x128xf32> -> vector<24x128xf32>
    %cst_122 = arith.constant dense<0.000000e+00> : vector<24x128xf32>
    %140 = tpu.matmul %138, %125, %cst_122 {dimension_numbers = #tpu.dot_dimension_numbers<[1], [0], [0], [1], [0, 0, 1, 1], [], []>} : vector<24x128xf32>, vector<128x128xf32>, vector<24x128xf32> -> vector<24x128xf32>
    %141 = arith.addf %139, %140 : vector<24x128xf32>
    %142 = vector.broadcast %131 : vector<1x128xf32> to vector<24x128xf32>
    %143 = arith.addf %141, %142 : vector<24x128xf32>
    %c20 = arith.constant 20 : index
    %c0_123 = arith.constant 0 : index
    %c0_124 = arith.constant 0 : index
    %144 = vector.load %arg5[%c20, %c0_123, %c0_124] : memref<24x128x128xf32, #tpu.memory_space<vmem>>, vector<1x128x128xf32>
    %145 = vector.shape_cast %144 : vector<1x128x128xf32> to vector<128x128xf32>
    %c21 = arith.constant 21 : index
    %c0_125 = arith.constant 0 : index
    %c0_126 = arith.constant 0 : index
    %146 = vector.load %arg5[%c21, %c0_125, %c0_126] : memref<24x128x128xf32, #tpu.memory_space<vmem>>, vector<1x128x128xf32>
    %147 = vector.shape_cast %146 : vector<1x128x128xf32> to vector<128x128xf32>
    %c22 = arith.constant 22 : index
    %c0_127 = arith.constant 0 : index
    %c0_128 = arith.constant 0 : index
    %148 = vector.load %arg5[%c22, %c0_127, %c0_128] : memref<24x128x128xf32, #tpu.memory_space<vmem>>, vector<1x128x128xf32>
    %149 = vector.shape_cast %148 : vector<1x128x128xf32> to vector<128x128xf32>
    %c23 = arith.constant 23 : index
    %c0_129 = arith.constant 0 : index
    %c0_130 = arith.constant 0 : index
    %150 = vector.load %arg5[%c23, %c0_129, %c0_130] : memref<24x128x128xf32, #tpu.memory_space<vmem>>, vector<1x128x128xf32>
    %151 = vector.shape_cast %150 : vector<1x128x128xf32> to vector<128x128xf32>
    %c15_131 = arith.constant 15 : index
    %c0_132 = arith.constant 0 : index
    %c0_133 = arith.constant 0 : index
    %152 = vector.load %arg6[%c15_131, %c0_132, %c0_133] : memref<18x1x128xf32, #tpu.memory_space<vmem>>, vector<1x1x128xf32>
    %153 = vector.shape_cast %152 : vector<1x1x128xf32> to vector<1x128xf32>
    %c16_134 = arith.constant 16 : index
    %c0_135 = arith.constant 0 : index
    %c0_136 = arith.constant 0 : index
    %154 = vector.load %arg6[%c16_134, %c0_135, %c0_136] : memref<18x1x128xf32, #tpu.memory_space<vmem>>, vector<1x1x128xf32>
    %155 = vector.shape_cast %154 : vector<1x1x128xf32> to vector<1x128xf32>
    %c17_137 = arith.constant 17 : index
    %c0_138 = arith.constant 0 : index
    %c0_139 = arith.constant 0 : index
    %156 = vector.load %arg6[%c17_137, %c0_138, %c0_139] : memref<18x1x128xf32, #tpu.memory_space<vmem>>, vector<1x1x128xf32>
    %157 = vector.shape_cast %156 : vector<1x1x128xf32> to vector<1x128xf32>
    %cst_140 = arith.constant dense<0.000000e+00> : vector<24x128xf32>
    %158 = tpu.matmul %2, %91, %cst_140 {dimension_numbers = #tpu.dot_dimension_numbers<[1], [0], [0], [1], [0, 0, 1, 1], [], []>} : vector<24x24xf32>, vector<24x128xf32>, vector<24x128xf32> -> vector<24x128xf32>
    %cst_141 = arith.constant dense<0.000000e+00> : vector<24x128xf32>
    %159 = tpu.matmul %158, %145, %cst_141 {dimension_numbers = #tpu.dot_dimension_numbers<[1], [0], [0], [1], [0, 0, 1, 1], [], []>} : vector<24x128xf32>, vector<128x128xf32>, vector<24x128xf32> -> vector<24x128xf32>
    %160 = vector.broadcast %153 : vector<1x128xf32> to vector<24x128xf32>
    %161 = arith.addf %159, %160 : vector<24x128xf32>
    %cst_142 = arith.constant dense<0.000000e+00> : vector<24x128xf32>
    %162 = tpu.matmul %91, %147, %cst_142 {dimension_numbers = #tpu.dot_dimension_numbers<[1], [0], [0], [1], [0, 0, 1, 1], [], []>} : vector<24x128xf32>, vector<128x128xf32>, vector<24x128xf32> -> vector<24x128xf32>
    %163 = vector.broadcast %155 : vector<1x128xf32> to vector<24x128xf32>
    %164 = arith.addf %162, %163 : vector<24x128xf32>
    %cst_143 = arith.constant dense<0.000000e+00> : vector<24x128xf32>
    %165 = tpu.matmul %161, %149, %cst_143 {dimension_numbers = #tpu.dot_dimension_numbers<[1], [0], [0], [1], [0, 0, 1, 1], [], []>} : vector<24x128xf32>, vector<128x128xf32>, vector<24x128xf32> -> vector<24x128xf32>
    %cst_144 = arith.constant dense<0.000000e+00> : vector<24x128xf32>
    %166 = tpu.matmul %164, %151, %cst_144 {dimension_numbers = #tpu.dot_dimension_numbers<[1], [0], [0], [1], [0, 0, 1, 1], [], []>} : vector<24x128xf32>, vector<128x128xf32>, vector<24x128xf32> -> vector<24x128xf32>
    %167 = arith.addf %165, %166 : vector<24x128xf32>
    %168 = vector.broadcast %157 : vector<1x128xf32> to vector<24x128xf32>
    %169 = arith.addf %167, %168 : vector<24x128xf32>
    %170 = arith.addf %143, %169 : vector<24x128xf32>
    %c0_145 = arith.constant 0 : index
    %c0_146 = arith.constant 0 : index
    %171 = vector.load %arg7[%c0_145, %c0_146] : memref<24x128xf32, #tpu.memory_space<vmem>>, vector<24x128xf32>
    tpu.vector_store %arg7[%c0_145, %c0_146], %170 {strides = array<i32>} : memref<24x128xf32, #tpu.memory_space<vmem>>, vector<24x128xf32>,
    %c0_147 = arith.constant 0 : index
    %c0_148 = arith.constant 0 : index
    %172 = vector.load %arg8[%c0_147, %c0_148] : memref<16x128xf32, #tpu.memory_space<vmem>>, vector<16x128xf32>
    tpu.vector_store %arg8[%c0_147, %c0_148], %117 {strides = array<i32>} : memref<16x128xf32, #tpu.memory_space<vmem>>, vector<16x128xf32>,
    return
  }
}

</mosaic_0001>

<bundles_post_ra>
// kernel: tpu_custom_call.1
= control target key start
LH: loop header
LB: loop body
LE: loop exit
PB: predicated region body
PF: predicated region fallthrough
CT: control target
= control target key end

     0   :  { %14 = vsyncpa [#allocation3], 0  ;;  %s6152_s0 = inlined_call_operand.hbm [shape: f32[24,128], index: 0, kind: input, shape index: {}]   ;;  %s6153_s1 = inlined_call_operand.hbm [shape: f32[16,128], index: 1, kind: input, shape index: {}]   ;;  %s6154_s2 = inlined_call_operand.hbm [shape: f32[16,24], index: 2, kind: input, shape index: {}]   ;;  %s6155_s3 = inlined_call_operand.vmem [shape: f32[24,16], index: 3, kind: input, shape index: {}]   ;;  %s6156_s4 = inlined_call_operand.hbm [shape: f32[24,24], index: 4, kind: input, shape index: {}]   ;;  %s6157_s5 = inlined_call_operand.hbm [shape: f32[24,128,128], index: 5, kind: input, shape index: {}]   ;;  %s6158_s6 = inlined_call_operand.hbm [shape: f32[18,1,128], index: 6, kind: input, shape index: {}]   ;;  %s6159_s7 = inlined_call_operand.hbm [shape: f32[24,128], index: 7, kind: output, shape index: {0}]   ;;  %s6160_s8 = inlined_call_operand.hbm [shape: f32[16,128], index: 8, kind: output, shape index: {1}]  }
   0x1   :  { %15 = vsyncpa [#allocation6], 0 }
   0x2   :  { %16 = vsyncpa [#allocation9], 0 }
   0x3   :  { %17 = vsyncpa [#allocation12], 0 }
   0x4   :  { %18 = vsyncpa [#allocation4], 0 }
   0x5   :  { %19 = vsyncpa [#allocation15], 0  ;;  %s5571_s27 = smov [#allocation5]   ;;  %s5572_s29 = smov [#allocation8]  }
   0x6   :  { %s37_s28 = sshll.u32 %s5571_s27, 4  ;;  %s63_s30 = sshll.u32 %s5572_s29, 4  ;;  %s38_s28 = int_to_ptr.vmem [resolvable:$true] %s37_s28  ;;  %s5631_s30 = int_to_ptr.vmem [resolvable:$true] %s63_s30 }
   0x7   :  { %s5383_s11 = scalar_lea.hbm %s6153_s1, 256 }
   0x8   :  { %p5384_p0 = scmp.ne.s32.totalorder %s6153_s1, %s5383_s11  ;;  %p5387_p1 = scmp.lt.u32.totalorder %s5383_s11, %s6153_s1 }
   0xa   :  { %p5389_p2 = pnand %p5387_p1, %p5384_p0 }
   0xc   :  { %5392 = shalt.err (!%p5389_p2)
}
   0xd   :  { %s5393_s16 = scalar_lea.vmem %s38_s28, 256  ;;  %p5398_p4 = scmp.lt.s32.totalorder %s38_s28, %s38_s28 }
   0xe   :  { %p5394_p3 = scmp.ne.s32.totalorder %s38_s28, %s5393_s16  ;;  %p5399_p5 = scmp.lt.s32.totalorder %s5393_s16, %s5393_s16 }
  0x10   :  { %p5400_p6 = por %p5399_p5, %p5398_p4 }
  0x12   :  { %p5401_p7 = pnand %p5400_p6, %p5394_p3 }
  0x14   :  { %5404 = shalt.err (!%p5401_p7)
}
  0x15   :  { %s5573_s17 = smov 128   ;;  %s5574_s18 = smov 8  }
  0x16   :  { %43 = dma.hbm_to_vmem [thread:$0]  %s6153_s1, 256, %s38_s28, [#allocation6], %s5573_s17, %s5573_s17, %s5574_s18  }
  0x17   :  { %s5405_s23 = scalar_lea.hbm %s6156_s4, 384 }
  0x18   :  { %p5406_p8 = scmp.ne.s32.totalorder %s6156_s4, %s5405_s23  ;;  %p5409_p9 = scmp.lt.u32.totalorder %s5405_s23, %s6156_s4 }
  0x1a   :  { %p5411_p10 = pnand %p5409_p9, %p5406_p8 }
  0x1c   :  { %5414 = shalt.err (!%p5411_p10)
}
  0x1d   :  { %s5415_s29 = scalar_lea.vmem %s5631_s30, 384  ;;  %p5420_p12 = scmp.lt.s32.totalorder %s5631_s30, %s5631_s30 }
  0x1e   :  { %p5416_p11 = scmp.ne.s32.totalorder %s5631_s30, %s5415_s29  ;;  %p5421_p13 = scmp.lt.s32.totalorder %s5415_s29, %s5415_s29 }
  0x20   :  { %p5422_p0 = por %p5421_p13, %p5420_p12 }
  0x22   :  { %p5423_p1 = pnand %p5422_p0, %p5416_p11 }
  0x24   :  { %5426 = shalt.err (!%p5423_p1)
}
  0x25   :  { %69 = dma.hbm_to_vmem [thread:$0]  %s6156_s4, 384, %s5631_s30, [#allocation9], %s5573_s17, %s5573_s17, %s5574_s18  }
  0x26   :  { %s5575_s9 = smov [#allocation2]   ;;  %s5576_s11 = smov [#allocation7]  }
  0x27   :  { %s25_s10 = sshll.u32 %s5575_s9, 4  ;;  %s49_s12 = sshll.u32 %s5576_s11, 4  ;;  %s26_s10 = int_to_ptr.vmem [resolvable:$true] %s25_s10  ;;  %s5668_s12 = int_to_ptr.vmem [resolvable:$true] %s49_s12 }
  0x28   :  { %s5427_s15 = scalar_lea.hbm %s6152_s0, 384 }
  0x29   :  { %p5428_p2 = scmp.ne.s32.totalorder %s6152_s0, %s5427_s15  ;;  %p5431_p3 = scmp.lt.u32.totalorder %s5427_s15, %s6152_s0 }
  0x2b   :  { %p5433_p4 = pnand %p5431_p3, %p5428_p2 }
  0x2d   :  { %5436 = shalt.err (!%p5433_p4)
}
  0x2e   :  { %s5437_s4 = scalar_lea.vmem %s26_s10, 384  ;;  %p5442_p6 = scmp.lt.s32.totalorder %s26_s10, %s26_s10 }
  0x2f   :  { %p5438_p5 = scmp.ne.s32.totalorder %s26_s10, %s5437_s4  ;;  %p5443_p7 = scmp.lt.s32.totalorder %s5437_s4, %s5437_s4 }
  0x31   :  { %p5444_p8 = por %p5443_p7, %p5442_p6 }
  0x33   :  { %p5445_p9 = pnand %p5444_p8, %p5438_p5 }
  0x35   :  { %5448 = shalt.err (!%p5445_p9)
}
  0x36   :  { %31 = dma.hbm_to_vmem [thread:$0]  %s6152_s0, 384, %s26_s10, [#allocation3], %s5573_s17, %s5573_s17, %s5574_s18  }
  0x37   :  { %s5449_s25 = scalar_lea.hbm %s6154_s2, 256 }
  0x38   :  { %p5450_p10 = scmp.ne.s32.totalorder %s6154_s2, %s5449_s25  ;;  %p5453_p11 = scmp.lt.u32.totalorder %s5449_s25, %s6154_s2 }
  0x3a   :  { %p5455_p12 = pnand %p5453_p11, %p5450_p10 }
  0x3c   :  { %5458 = shalt.err (!%p5455_p12)
}
  0x3d   :  { %s5459_s28 = scalar_lea.vmem %s5668_s12, 256  ;;  %p5464_p0 = scmp.lt.s32.totalorder %s5668_s12, %s5668_s12 }
  0x3e   :  { %p5460_p13 = scmp.ne.s32.totalorder %s5668_s12, %s5459_s28  ;;  %p5465_p1 = scmp.lt.s32.totalorder %s5459_s28, %s5459_s28 }
  0x40   :  { %p5466_p2 = por %p5465_p1, %p5464_p0 }
  0x42   :  { %p5467_p3 = pnand %p5466_p2, %p5460_p13 }
  0x44   :  { %5470 = shalt.err (!%p5467_p3)
}
  0x45   :  { %55 = dma.hbm_to_vmem [thread:$0]  %s6154_s2, 256, %s5668_s12, [#allocation6], %s5573_s17, %s5573_s17, %s5574_s18  }
  0x46   :  { %s5577_s10 = smov [#allocation10]   ;;  %s5578_s13 = smov [#allocation11]  }
  0x47   :  { %s75_s11 = sshll.u32 %s5577_s10, 4  ;;  %s87_s14 = sshll.u32 %s5578_s13, 4  ;;  %s76_s11 = int_to_ptr.vmem [resolvable:$true] %s75_s11  ;;  %s5705_s14 = int_to_ptr.vmem [resolvable:$true] %s87_s14 }
  0x48   :  { %s5471_s19 = scalar_lea.hbm %s6157_s5, 49152 }
  0x49   :  { %p5472_p4 = scmp.ne.s32.totalorder %s6157_s5, %s5471_s19  ;;  %p5475_p5 = scmp.lt.u32.totalorder %s5471_s19, %s6157_s5 }
  0x4b   :  { %p5477_p6 = pnand %p5475_p5, %p5472_p4 }
  0x4d   :  { %5480 = shalt.err (!%p5477_p6)
}
  0x4e   :  { %s5481_s2 = scalar_lea.vmem %s76_s11, 49152  ;;  %p5486_p8 = scmp.lt.s32.totalorder %s76_s11, %s76_s11 }
  0x4f   :  { %p5482_p7 = scmp.ne.s32.totalorder %s76_s11, %s5481_s2  ;;  %p5487_p9 = scmp.lt.s32.totalorder %s5481_s2, %s5481_s2 }
  0x51   :  { %p5488_p10 = por %p5487_p9, %p5486_p8 }
  0x53   :  { %p5489_p11 = pnand %p5488_p10, %p5482_p7 }
  0x55   :  { %5492 = shalt.err (!%p5489_p11)
}
  0x56   :  { %81 = dma.hbm_to_vmem [thread:$0]  %s6157_s5, 49152, %s76_s11, [#allocation9], %s5573_s17, %s5573_s17, %s5574_s18  }
  0x57   :  { %s5493_s25 = scalar_lea.hbm %s6158_s6, 288 }
  0x58   :  { %p5494_p12 = scmp.ne.s32.totalorder %s6158_s6, %s5493_s25  ;;  %p5497_p13 = scmp.lt.u32.totalorder %s5493_s25, %s6158_s6 }
  0x5a   :  { %p5499_p0 = pnand %p5497_p13, %p5494_p12 }
  0x5c   :  { %5502 = shalt.err (!%p5499_p0)
}
  0x5d   :  { %s5503_s28 = scalar_lea.vmem %s5705_s14, 288  ;;  %p5508_p2 = scmp.lt.s32.totalorder %s5705_s14, %s5705_s14 }
  0x5e   :  { %p5504_p1 = scmp.ne.s32.totalorder %s5705_s14, %s5503_s28  ;;  %p5509_p3 = scmp.lt.s32.totalorder %s5503_s28, %s5503_s28 }
  0x60   :  { %p5510_p4 = por %p5509_p3, %p5508_p2 }
  0x62   :  { %p5511_p5 = pnand %p5510_p4, %p5504_p1 }
  0x64   :  { %5514 = shalt.err (!%p5511_p5)
}
  0x65   :  { %s5579_s5 = smov 16   ;;  %s5580_s0 = smov 1  }
  0x66   :  { %93 = dma.hbm_to_vmem [thread:$0]  %s6158_s6, 288, %s5705_s14, [#allocation12], %s5579_s5, %s5579_s5, %s5580_s0  }
  0x67   :  { %5559 = dma.done.wait [#allocation3], 384  }
  0x68   :  { %5560 = vsyncadd [#allocation3], 4294966912 }
  0x69   :  { %5561 = dma.done.wait [#allocation6], 512  }
  0x6a   :  { %5562 = vsyncadd [#allocation6], 4294966784 }
  0x6b   :  { %5563 = dma.done.wait [#allocation9], 49536  }
  0x6c   :  { %5564 = vsyncadd [#allocation9], 4294917760 }
  0x6d   :  { %5565 = dma.done.wait [#allocation12], 288  }
  0x6e   :  { %5566 = vsyncadd [#allocation12], 4294967008  ;;  %vm202_vm0 = vcmask 195584   ;;  %v120_v0 = vld [vmem:[#allocation2] sm:$0xff]  ;;  %v121_v1 = vld [vmem:[#allocation2 + $0x8] sm:$0xff]  ;;  %vm5582_vm1 = vmmov 0  }
  0x6f   :  { %v122_v2 = vld [vmem:[#allocation2 + $0x10] sm:$0xff]  ;;  %v5739_v3 = vmax.f32 %v120_v0, 0.0  ;;  %v5741_v4 = vmax.f32 %v121_v1, 0.0  ;;  %v112_v5 = vld [vmem:[#allocation7] sm:$0xff]  ;;  %v131_v9 = vld [vmem:[#allocation10 + $0x8] sm:$0xff]  ;;  %v5581_v0 = vmov 0.0|0.0  }
  0x70   :  { %3644 = vmatprep.mubr.msk.f32.mxu0 %vm202_vm0, %v112_v5  ;;  %v5748_v7 = vmax.f32 %v122_v2, 0.0  ;;  %v130_v8 = vld [vmem:[#allocation10] sm:$0xff]  ;;  %v132_v10 = vld [vmem:[#allocation10 + $0x10] sm:$0xff]  ;;  %v133_v11 = vld [vmem:[#allocation10 + $0x18] sm:$0xff]  ;;  %v5583_v1 = vmov 0.0   ;;  %vm678_vm2 = vcmask 130048  }
  0x71   :  { %v5746_v6 = vpack.c.bf16 %v5741_v4, %v5739_v3  ;;  %v4652_v12 = vpack.c.bf16 %v131_v9, %v130_v8  ;;  %v113_v13 = vld [vmem:[#allocation7 + $0x8] sm:$0xff]  ;;  %v4656_v14 = vpack.c.bf16 %v133_v11, %v132_v10  ;;  %v135_v16 = vld [vmem:[#allocation10 + $0x28] sm:$0xff]  ;;  %v136_v18 = vld [vmem:[#allocation10 + $0x30] sm:$0xff] }
  0x72   :  { %v134_v15 = vld [vmem:[#allocation10 + $0x20] sm:$0xff]  ;;  %v137_v19 = vld [vmem:[#allocation10 + $0x38] sm:$0xff]  ;;  %v139_v22 = vld [vmem:[#allocation10 + $0x48] sm:$0xff] }
  0x73   :  { %4649 = vmatprep.subr.bf16.mxu0 %v5746_v6  ;;  %v4660_v17 = vpack.c.bf16 %v135_v16, %v134_v15  ;;  %v4664_v20 = vpack.c.bf16 %v137_v19, %v136_v18  ;;  %v138_v21 = vld [vmem:[#allocation10 + $0x40] sm:$0xff]  ;;  %v140_v24 = vld [vmem:[#allocation10 + $0x50] sm:$0xff]  ;;  %v141_v25 = vld [vmem:[#allocation10 + $0x58] sm:$0xff] }
  0x74   :  { %4651 = vmatpush3.bf16.msra.mxu0 %v5746_v6  ;;  %v4668_v23 = vpack.c.bf16 %v139_v22, %v138_v21  ;;  %v4672_v26 = vpack.c.bf16 %v141_v25, %v140_v24  ;;  %v142_v27 = vld [vmem:[#allocation10 + $0x60] sm:$0xff]  ;;  %v143_v28 = vld [vmem:[#allocation10 + $0x68] sm:$0xff]  ;;  %v144_v30 = vld [vmem:[#allocation10 + $0x70] sm:$0xff] }
  0x75   :  { %3642 = vmatprep.subr.mxu0 %v5748_v7  ;;  %v4676_v29 = vpack.c.bf16 %v143_v28, %v142_v27  ;;  %v145_v31 = vld [vmem:[#allocation10 + $0x78] sm:$0xff]  ;;  %v147_v33 = vld [vmem:[#allocation10 + $0x80] sm:$0xff]  ;;  %v148_v34 = vld [vmem:[#allocation10 + $0x88] sm:$0xff] }
  0x76   :  { %v4680_v32 = vpack.c.bf16 %v145_v31, %v144_v30  ;;  %v4684_v35 = vpack.c.bf16 %v148_v34, %v147_v33  ;;  %v123_v36 = vld [vmem:[#allocation5] sm:$0xff]  ;;  %v149_v37 = vld [vmem:[#allocation10 + $0x90] sm:$0xff]  ;;  %v150_v38 = vld [vmem:[#allocation10 + $0x98] sm:$0xff] }
  0x77   :  { %v128_v40 = vmax.f32 %v123_v36, 0.0  ;;  %v4688_v42 = vpack.c.bf16 %v150_v38, %v149_v37  ;;  %v151_v43 = vld [vmem:[#allocation10 + $0xa0] sm:$0xff]  ;;  %v152_v44 = vld [vmem:[#allocation10 + $0xa8] sm:$0xff]  ;;  %v153_v46 = vld [vmem:[#allocation10 + $0xb0] sm:$0xff] }
  0x78   :  { %3643 = vmatpush3.msra.mxu0 %v5748_v7  ;;  %v4692_v45 = vpack.c.bf16 %v152_v44, %v151_v43  ;;  %v154_v47 = vld [vmem:[#allocation10 + $0xb8] sm:$0xff]  ;;  %v155_v49 = vld [vmem:[#allocation10 + $0xc0] sm:$0xff]  ;;  %v156_v50 = vld [vmem:[#allocation10 + $0xc8] sm:$0xff] }
  0x79   :  { %3645 = vmatmul.mubr.msk.f32.vlgmr.msra.gmra.mrb[0].mxu0 %vm202_vm0, %v113_v13  ;;  %4653 = vmatprep.subr.bf16.mxu0 %v4652_v12  ;;  %v4696_v48 = vpack.c.bf16 %v154_v47, %v153_v46  ;;  %v4700_v51 = vpack.c.bf16 %v156_v50, %v155_v49  ;;  %v157_v52 = vld [vmem:[#allocation10 + $0xd0] sm:$0xff]  ;;  %v158_v53 = vld [vmem:[#allocation10 + $0xd8] sm:$0xff]  ;;  %v159_v55 = vld [vmem:[#allocation10 + $0xe0] sm:$0xff] }
  0x7a   :  { %4655 = vmatpush3.bf16.msra.mxu0 %v4652_v12  ;;  %v4704_v54 = vpack.c.bf16 %v158_v53, %v157_v52  ;;  %v160_v56 = vld [vmem:[#allocation10 + $0xe8] sm:$0xff]  ;;  %v161_v58 = vld [vmem:[#allocation10 + $0xf0] sm:$0xff]  ;;  %v162_v59 = vld [vmem:[#allocation10 + $0xf8] sm:$0xff] }
  0x7b   :  { %4657 = vmatprep.subr.bf16.mxu0 %v4656_v14  ;;  %v4708_v57 = vpack.c.bf16 %v160_v56, %v159_v55  ;;  %v4712_v60 = vpack.c.bf16 %v162_v59, %v161_v58  ;;  %v124_v61 = vld [vmem:[#allocation5 + $0x8] sm:$0xff]  ;;  %v115_v5 = vld [vmem:[%s6155_s3 + $0x8] sm:$0xff]  ;;  %v116_v8 = vld [vmem:[%s6155_s3 + $0x10] sm:$0xff] }
  0x7c   :  { %v129_v62 = vmax.f32 %v124_v61, 0.0  ;;  %v114_v2 = vld [vmem:[%s6155_s3] sm:$0xff]  ;;  %v181_v9 = vld [vmem:[#allocation10 + $0x180] sm:$0xff]  ;;  %v182_v10 = vld [vmem:[#allocation10 + $0x188] sm:$0xff] }
  0x7d   :  { %v4716_v11 = vpack.c.bf16 %v182_v10, %v181_v9  ;;  %v605_v12 = vld [vmem:[#allocation10 + $0x200] sm:$0xff]  ;;  %v606_v13 = vld [vmem:[#allocation10 + $0x208] sm:$0xff]  ;;  %v184_v16 = vld [vmem:[#allocation10 + $0x198] sm:$0xff] }
  0x7e   :  { %4659 = vmatpush3.bf16.msra.mxu0 %v4656_v14  ;;  %v4781_v63 = vpack.c.bf16 %v129_v62, %v128_v40  ;;  %v183_v14 = vld [vmem:[#allocation10 + $0x190] sm:$0xff]  ;;  %v4784_v15 = vpack.c.bf16 %v606_v13, %v605_v12  ;;  %v608_v18 = vld [vmem:[#allocation10 + $0x218] sm:$0xff]  ;;  %v186_v21 = vld [vmem:[#allocation10 + $0x1a8] sm:$0xff] }
  0x7f   :  { %4661 = vmatprep.subr.bf16.mxu0 %v4660_v17  ;;  %4717 = vmatprep.subr.bf16.mxu1 %v4716_v11  ;;  %v4720_v19 = vpack.c.bf16 %v184_v16, %v183_v14  ;;  %v609_v24 = vld [vmem:[#allocation10 + $0x220] sm:$0xff]  ;;  %v610_v25 = vld [vmem:[#allocation10 + $0x228] sm:$0xff]  ;;  %v188_v27 = vld [vmem:[#allocation10 + $0x1b8] sm:$0xff] }
  0x80   :  { %4719 = vmatpush3.bf16.msra.mxu1 %v4716_v11  ;;  %v4790_v28 = vpack.c.bf16 %v610_v25, %v609_v24  ;;  %v611_v30 = vld [vmem:[#allocation10 + $0x230] sm:$0xff]  ;;  %v612_v31 = vld [vmem:[#allocation10 + $0x238] sm:$0xff]  ;;  %v190_v33 = vld [vmem:[#allocation10 + $0x1c8] sm:$0xff] }
  0x81   :  { %4721 = vmatprep.subr.bf16.mxu1 %v4720_v19  ;;  %v4793_v34 = vpack.c.bf16 %v612_v31, %v611_v30  ;;  %v613_v36 = vld [vmem:[#allocation10 + $0x240] sm:$0xff]  ;;  %v614_v37 = vld [vmem:[#allocation10 + $0x248] sm:$0xff]  ;;  %v191_v38 = vld [vmem:[#allocation10 + $0x1d0] sm:$0xff] }
  0x82   :  { %4663 = vmatpush3.bf16.msra.mxu0 %v4660_v17  ;;  %v607_v17 = vld [vmem:[#allocation10 + $0x210] sm:$0xff]  ;;  %v616_v43 = vld [vmem:[#allocation10 + $0x258] sm:$0xff]  ;;  %v193_v44 = vld [vmem:[#allocation10 + $0x1e0] sm:$0xff] }
  0x83   :  { %4665 = vmatprep.subr.bf16.mxu0 %v4664_v20  ;;  %v4787_v22 = vpack.c.bf16 %v608_v18, %v607_v17  ;;  %v618_v49 = vld [vmem:[#allocation10 + $0x268] sm:$0xff]  ;;  %v196_v52 = vld [vmem:[#allocation10 + $0x1f8] sm:$0xff]  ;;  %v5787_v11 = vld [vmem:[#allocation11] ss:$0 sm:$0xff] }
  0x84   :  { %4723 = vmatpush3.bf16.msra.mxu1 %v4720_v19  ;;  %v620_v55 = vld [vmem:[#allocation10 + $0x278] sm:$0xff]  ;;  %v165_v58 = vld [vmem:[#allocation10 + $0x108] sm:$0xff]  ;;  %v624_v16 = vld [vmem:[#allocation10 + $0x290] sm:$0xff] }
  0x85   :  { %v167_v9 = vld [vmem:[#allocation10 + $0x118] sm:$0xff]  ;;  %v168_v19 = vld [vmem:[#allocation10 + $0x120] sm:$0xff] }
  0x86   :  { %4667 = vmatpush3.bf16.msra.mxu0 %v4664_v20  ;;  %v185_v20 = vld [vmem:[#allocation10 + $0x1a0] sm:$0xff]  ;;  %v625_v17 = vld [vmem:[#allocation10 + $0x298] sm:$0xff] }
  0x87   :  { %4669 = vmatprep.subr.bf16.mxu0 %v4668_v23  ;;  %v626_v25 = vld [vmem:[#allocation10 + $0x2a0] sm:$0xff] }
  0x8a   :  { %4671 = vmatpush3.bf16.msra.mxu0 %v4668_v23  ;;  %v4724_v23 = vpack.c.bf16 %v186_v21, %v185_v20  ;;  %v169_v20 = vld [vmem:[#allocation10 + $0x128] sm:$0xff] }
  0x8b   :  { %4673 = vmatprep.subr.bf16.mxu0 %v4672_v26  ;;  %v4756_v24 = vpack.c.bf16 %v169_v20, %v168_v19  ;;  %v1113_v19 = vld [vmem:[#allocation10 + $0x418] sm:$0xff] }
  0x8c   :  { %4725 = vmatprep.subr.bf16.mxu1 %v4724_v23 }
  0x8d   :  { %4727 = vmatpush3.bf16.msra.mxu1 %v4724_v23  ;;  %v4811_v23 = vpack.c.bf16 %v625_v17, %v624_v16  ;;  %v1112_v16 = vld [vmem:[#allocation10 + $0x410] sm:$0xff]  ;;  %v660_v17 = vld [vmem:[#allocation10 + $0x3a0] sm:$0xff] }
  0x8e   :  { %4675 = vmatpush3.bf16.msra.mxu0 %v4672_v26  ;;  %v187_v26 = vld [vmem:[#allocation10 + $0x1b0] sm:$0xff]  ;;  %v4886_v20 = vpack.c.bf16 %v1113_v19, %v1112_v16  ;;  %v1127_v19 = vld [vmem:[#allocation10 + $0x480] sm:$0xff] }
  0x8f   :  { %4677 = vmatprep.subr.bf16.mxu0 %v4676_v29 }
  0x92   :  { %4679 = vmatpush3.bf16.msra.mxu0 %v4676_v29  ;;  %v4728_v29 = vpack.c.bf16 %v188_v27, %v187_v26  ;;  %v627_v26 = vld [vmem:[#allocation10 + $0x2a8] sm:$0xff]  ;;  %v170_v27 = vld [vmem:[#allocation10 + $0x130] sm:$0xff] }
  0x93   :  { %4681 = vmatprep.subr.bf16.mxu0 %v4680_v32  ;;  %v4814_v31 = vpack.c.bf16 %v627_v26, %v626_v25  ;;  %v663_v25 = vld [vmem:[#allocation10 + $0x3b8] sm:$0xff] }
  0x94   :  { %4729 = vmatprep.subr.bf16.mxu1 %v4728_v29 }
  0x95   :  { %4731 = vmatpush3.bf16.msra.mxu1 %v4728_v29 }
  0x96   :  { %4683 = vmatpush3.bf16.msra.mxu0 %v4680_v32  ;;  %v189_v32 = vld [vmem:[#allocation10 + $0x1c0] sm:$0xff] }
  0x97   :  { %4685 = vmatprep.subr.bf16.mxu0 %v4684_v35 }
 0x14c   :  { %v3646_v39 = vpop.f32.mrb[0].mxu0 }
 0x14d   :  { %v275_v41 = vpop.f32.mrb[1].mxu0 }
 0x14e   :  { %3679 = vmatprep.mubr.f32.mxu0 %v275_v41 }
 0x14f   :  { %3680 = vmatmul.mubr.f32.vlgmr.msra.gmra.mrb[2].mxu0 %v3646_v39  ;;  %v192_v39 = vld [vmem:[#allocation10 + $0x1d8] sm:$0xff] }
 0x150   :  { %4687 = vmatpush3.bf16.msra.mxu0 %v4684_v35  ;;  %3714 = vmatprep.mubr.f32.mxu0 %v128_v40  ;;  %v4732_v35 = vpack.c.bf16 %v190_v33, %v189_v32  ;;  %v4796_v40 = vpack.c.bf16 %v614_v37, %v613_v36  ;;  %v4736_v41 = vpack.c.bf16 %v192_v39, %v191_v38  ;;  %v628_v33 = vld [vmem:[#allocation10 + $0x2b0] sm:$0xff]  ;;  %v173_v36 = vld [vmem:[#allocation10 + $0x148] sm:$0xff] }
 0x151   :  { %4689 = vmatprep.subr.bf16.mxu0 %v4688_v42 }
 0x152   :  { %4733 = vmatprep.subr.bf16.mxu1 %v4732_v35 }
 0x153   :  { %4735 = vmatpush3.bf16.msra.mxu1 %v4732_v35  ;;  %v172_v35 = vld [vmem:[#allocation10 + $0x140] sm:$0xff] }
 0x154   :  { %4691 = vmatpush3.bf16.msra.mxu0 %v4688_v42  ;;  %v615_v42 = vld [vmem:[#allocation10 + $0x250] sm:$0xff]  ;;  %4737 = vmatprep.subr.bf16.mxu1 %v4736_v41 }
 0x155   :  { %4693 = vmatprep.subr.bf16.mxu0 %v4692_v45  ;;  %v4799_v46 = vpack.c.bf16 %v616_v43, %v615_v42  ;;  %v631_v42 = vld [vmem:[#allocation10 + $0x2c8] sm:$0xff]  ;;  %v174_v43 = vld [vmem:[#allocation10 + $0x150] sm:$0xff] }
 0x157   :  { %4739 = vmatpush3.bf16.msra.mxu1 %v4736_v41  ;;  %v630_v41 = vld [vmem:[#allocation10 + $0x2c0] sm:$0xff] }
 0x158   :  { %4695 = vmatpush3.bf16.msra.mxu0 %v4692_v45  ;;  %v194_v45 = vld [vmem:[#allocation10 + $0x1e8] sm:$0xff] }
 0x159   :  { %4697 = vmatprep.subr.bf16.mxu0 %v4696_v48  ;;  %v4740_v47 = vpack.c.bf16 %v194_v45, %v193_v44  ;;  %v175_v44 = vld [vmem:[#allocation10 + $0x158] sm:$0xff]  ;;  %v4820_v45 = vpack.c.bf16 %v631_v42, %v630_v41  ;;  %v669_v41 = vld [vmem:[#allocation10 + $0x3e8] sm:$0xff] }
 0x15b   :  { %4741 = vmatprep.subr.bf16.mxu1 %v4740_v47 }
 0x15c   :  { %4699 = vmatpush3.bf16.msra.mxu0 %v4696_v48  ;;  %v617_v48 = vld [vmem:[#allocation10 + $0x260] sm:$0xff]  ;;  %4743 = vmatpush3.bf16.msra.mxu1 %v4740_v47  ;;  %v632_v47 = vld [vmem:[#allocation10 + $0x2d0] sm:$0xff] }
 0x15d   :  { %4701 = vmatprep.subr.bf16.mxu0 %v4700_v51  ;;  %v4802_v50 = vpack.c.bf16 %v618_v49, %v617_v48  ;;  %v633_v48 = vld [vmem:[#allocation10 + $0x2d8] sm:$0xff]  ;;  %v176_v49 = vld [vmem:[#allocation10 + $0x160] sm:$0xff] }
 0x160   :  { %4703 = vmatpush3.bf16.msra.mxu0 %v4700_v51  ;;  %v195_v51 = vld [vmem:[#allocation10 + $0x1f0] sm:$0xff] }
 0x161   :  { %4705 = vmatprep.subr.bf16.mxu0 %v4704_v54  ;;  %v4744_v53 = vpack.c.bf16 %v196_v52, %v195_v51  ;;  %v4823_v51 = vpack.c.bf16 %v633_v48, %v632_v47  ;;  %v1121_v47 = vld [vmem:[#allocation10 + $0x458] sm:$0xff] }
 0x163   :  { %4745 = vmatprep.subr.bf16.mxu1 %v4744_v53 }
 0x164   :  { %4707 = vmatpush3.bf16.msra.mxu0 %v4704_v54  ;;  %v619_v54 = vld [vmem:[#allocation10 + $0x270] sm:$0xff]  ;;  %4747 = vmatpush3.bf16.msra.mxu1 %v4744_v53  ;;  %v634_v53 = vld [vmem:[#allocation10 + $0x2e0] sm:$0xff] }
 0x165   :  { %4709 = vmatprep.subr.bf16.mxu0 %v4708_v57  ;;  %v4805_v56 = vpack.c.bf16 %v620_v55, %v619_v54  ;;  %v635_v54 = vld [vmem:[#allocation10 + $0x2e8] sm:$0xff]  ;;  %v178_v55 = vld [vmem:[#allocation10 + $0x170] sm:$0xff] }
 0x168   :  { %4711 = vmatpush3.bf16.msra.mxu0 %v4708_v57  ;;  %v164_v57 = vld [vmem:[#allocation10 + $0x100] sm:$0xff] }
 0x169   :  { %4713 = vmatprep.subr.bf16.mxu0 %v4712_v60  ;;  %v4748_v59 = vpack.c.bf16 %v165_v58, %v164_v57  ;;  %v4826_v57 = vpack.c.bf16 %v635_v54, %v634_v53  ;;  %v1125_v53 = vld [vmem:[#allocation10 + $0x478] sm:$0xff] }
 0x16b   :  { %4749 = vmatprep.subr.bf16.mxu1 %v4748_v59 }
 0x16c   :  { %4715 = vmatpush3.bf16.msra.mxu0 %v4712_v60 }
 0x16d   :  { %4780 = vmatprep.subr.bf16.mxu0 %v5581_v0 }
 0x16f   :  { %3715 = vmatmul.mubr.f32.vlgmr.msra.gmra.mrb[4].mxu0 %v129_v62  ;;  %v3127_v62 = vld [vmem:[#allocation11 + $0x1] ss:$0 sm:$0xff] }
 0x170   :  { %4782 = vmatpush3.bf16.msra.mxu0 %v4781_v63  ;;  %3791 = vmatprep.mubr.msk.f32.mxu0 %vm5582_vm1, %v5583_v1  ;;  %v622_v63 = vld [vmem:[#allocation10 + $0x280] sm:$0xff] }
 0x171   :  { %4783 = vmatprep.subr.bf16.mxu0 %v5581_v0 }
 0x173   :  { %3792 = vmatmul.mubr.msk.f32.vlgmr.msra.gmra.mrb[6].mxu0 %vm678_vm2, %v114_v2  ;;  %v623_v2 = vld [vmem:[#allocation10 + $0x288] sm:$0xff] }
 0x174   :  { %3794 = vmatprep.mubr.msk.f32.mxu0 %vm5582_vm1, %v5583_v1  ;;  %4785 = vmatpush3.bf16.msra.mxu0 %v4784_v15  ;;  %v4808_v13 = vpack.c.bf16 %v623_v2, %v622_v63  ;;  %v119_v2 = vld [vmem:[#allocation8 + $0x10] sm:$0xff] }
 0x175   :  { %4786 = vmatprep.subr.bf16.mxu0 %v5581_v0 }
 0x177   :  { %3795 = vmatmul.mubr.msk.f32.gmra.mrb[8].mxu0 %vm678_vm2, %v115_v5 }
 0x178   :  { %3797 = vmatprep.mubr.msk.f32.mxu0 %vm5582_vm1, %v5583_v1  ;;  %4788 = vmatpush3.bf16.msra.mxu0 %v4787_v22 }
 0x179   :  { %4789 = vmatprep.subr.bf16.mxu0 %v5581_v0 }
 0x17b   :  { %3798 = vmatmul.mubr.msk.f32.gmra.mrb[10].mxu0 %vm678_vm2, %v116_v8  ;;  %v166_v8 = vld [vmem:[#allocation10 + $0x110] sm:$0xff] }
 0x17c   :  { %3832 = vmatprep.mubr.msk.f32.mxu0 %vm5582_vm1, %v5583_v1  ;;  %4791 = vmatpush3.bf16.msra.mxu0 %v4790_v28  ;;  %v4752_v15 = vpack.c.bf16 %v167_v9, %v166_v8  ;;  %v171_v28 = vld [vmem:[#allocation10 + $0x138] sm:$0xff]  ;;  %v657_v8 = vld [vmem:[#allocation10 + $0x388] sm:$0xff] }
 0x17d   :  { %4792 = vmatprep.subr.bf16.mxu0 %v5581_v0  ;;  %v4760_v32 = vpack.c.bf16 %v171_v28, %v170_v27  ;;  %v1116_v27 = vld [vmem:[#allocation10 + $0x430] sm:$0xff]  ;;  %v1117_v28 = vld [vmem:[#allocation10 + $0x438] sm:$0xff] }
 0x180   :  { %4794 = vmatpush3.bf16.msra.mxu0 %v4793_v34  ;;  %v629_v34 = vld [vmem:[#allocation10 + $0x2b8] sm:$0xff] }
 0x181   :  { %4795 = vmatprep.subr.bf16.mxu0 %v5581_v0  ;;  %v4817_v39 = vpack.c.bf16 %v629_v34, %v628_v33  ;;  %v1118_v33 = vld [vmem:[#allocation10 + $0x440] sm:$0xff]  ;;  %v1119_v34 = vld [vmem:[#allocation10 + $0x448] sm:$0xff] }
 0x184   :  { %4797 = vmatpush3.bf16.msra.mxu0 %v4796_v40  ;;  %v4764_v40 = vpack.c.bf16 %v173_v36, %v172_v35  ;;  %v666_v36 = vld [vmem:[#allocation10 + $0x3d0] sm:$0xff] }
 0x185   :  { %4798 = vmatprep.subr.bf16.mxu0 %v5581_v0 }
 0x188   :  { %4800 = vmatpush3.bf16.msra.mxu0 %v4799_v46  ;;  %v4768_v46 = vpack.c.bf16 %v175_v44, %v174_v43  ;;  %v670_v43 = vld [vmem:[#allocation10 + $0x3f0] sm:$0xff]  ;;  %v671_v44 = vld [vmem:[#allocation10 + $0x3f8] sm:$0xff] }
 0x189   :  { %4801 = vmatprep.subr.bf16.mxu0 %v5581_v0 }
 0x18c   :  { %4803 = vmatpush3.bf16.msra.mxu0 %v4802_v50  ;;  %v177_v50 = vld [vmem:[#allocation10 + $0x168] sm:$0xff] }
 0x18d   :  { %4804 = vmatprep.subr.bf16.mxu0 %v5581_v0  ;;  %v4772_v52 = vpack.c.bf16 %v177_v50, %v176_v49  ;;  %v1122_v49 = vld [vmem:[#allocation10 + $0x460] sm:$0xff]  ;;  %v1123_v50 = vld [vmem:[#allocation10 + $0x468] sm:$0xff] }
 0x190   :  { %4806 = vmatpush3.bf16.msra.mxu0 %v4805_v56  ;;  %v179_v56 = vld [vmem:[#allocation10 + $0x178] sm:$0xff] }
 0x191   :  { %4807 = vmatprep.subr.bf16.mxu0 %v5581_v0  ;;  %v4776_v58 = vpack.c.bf16 %v179_v56, %v178_v55 }
 0x222   :  { %v5785_v60 = vpop.f32.mrb[2].mxu0 }
 0x223   :  { %v356_v61 = vpop.f32.mrb[3].mxu0  ;;  %v362_v63 = vadd.f32 %v5785_v60, %v5787_v11  ;;  %v118_v60 = vld [vmem:[#allocation8 + $0x8] sm:$0xff] }
 0x224   :  { %v357_v21 = vadd.f32 %v5787_v11, %v356_v61  ;;  %v637_v61 = vld [vmem:[#allocation10 + $0x2f8] sm:$0xff] }
 0x225   :  { %v659_v11 = vld [vmem:[#allocation10 + $0x398] sm:$0xff] }
 0x242   :  { %v3716_v5 = vpop.f32.mrb[4].mxu0 }
 0x243   :  { %v437_v10 = vpop.f32.mrb[5].mxu0  ;;  %v443_v14 = vadd.f32 %v3716_v5, %v3127_v62  ;;  %v656_v5 = vld [vmem:[#allocation10 + $0x380] sm:$0xff] }
 0x244   :  { %v438_v12 = vadd.f32 %v3127_v62, %v437_v10  ;;  %v4832_v9 = vpack.c.bf16 %v657_v8, %v656_v5  ;;  %v658_v10 = vld [vmem:[#allocation10 + $0x390] sm:$0xff] }
 0x246   :  { %3749 = vmatprep.mubr.f32.mxu1 %v438_v12  ;;  %v754_v18 = vpop.f32.mrb[6].mxu0  ;;  %v1110_v12 = vld [vmem:[#allocation10 + $0x400] sm:$0xff] }
 0x247   :  { %3750 = vmatmul.mubr.f32.vlgmr.msra.gmra.mrb[0].mxu1 %v443_v14  ;;  %v3793_v22 = vpop.f32.mrb[7].mxu0  ;;  %3833 = vmatmul.mubr.f32.vlgmr.msra.gmra.mrb[12].mxu0 %v754_v18  ;;  %v4835_v14 = vpack.c.bf16 %v659_v11, %v658_v10  ;;  %v661_v18 = vld [vmem:[#allocation10 + $0x3a8] sm:$0xff]  ;;  %v641_v11 = vld [vmem:[#allocation10 + $0x310] sm:$0xff] }
 0x248   :  { %4751 = vmatpush3.bf16.msra.mxu1 %v4748_v59  ;;  %4809 = vmatpush3.bf16.msra.mxu0 %v4808_v13  ;;  %v636_v59 = vld [vmem:[#allocation10 + $0x2f0] sm:$0xff]  ;;  %v1111_v13 = vld [vmem:[#allocation10 + $0x408] sm:$0xff] }
 0x249   :  { %3784 = vmatprep.mubr.f32.mxu1 %v357_v21  ;;  %4753 = vmatprep.subr.bf16.mxu1 %v4752_v15  ;;  %v4829_v62 = vpack.c.bf16 %v637_v61, %v636_v59  ;;  %v1114_v21 = vld [vmem:[#allocation10 + $0x420] sm:$0xff]  ;;  %v1115_v22 = vld [vmem:[#allocation10 + $0x428] sm:$0xff] }
 0x24a   :  { %4810 = vmatprep.subr.bf16.mxu0 %v5581_v0  ;;  %v759_v29 = vpop.f32.mrb[8].mxu0  ;;  %3835 = vmatprep.mubr.msk.f32.mxu0 %vm5582_vm1, %v5583_v1  ;;  %v4889_v26 = vpack.c.bf16 %v1115_v22, %v1114_v21 }
 0x24b   :  { %v3796_v30 = vpop.f32.mrb[9].mxu0  ;;  %3836 = vmatmul.mubr.f32.gmra.mrb[14].mxu0 %v759_v29 }
 0x24c   :  { %4755 = vmatpush3.bf16.msra.mxu1 %v4752_v15  ;;  %4812 = vmatpush3.bf16.msra.mxu0 %v4811_v23  ;;  %v4883_v15 = vpack.c.bf16 %v1111_v13, %v1110_v12  ;;  %v4838_v23 = vpack.c.bf16 %v661_v18, %v660_v17  ;;  %v664_v30 = vld [vmem:[#allocation10 + $0x3c0] sm:$0xff]  ;;  %v642_v12 = vld [vmem:[#allocation10 + $0x318] sm:$0xff]  ;;  %v644_v18 = vld [vmem:[#allocation10 + $0x328] sm:$0xff] }
 0x24d   :  { %4757 = vmatprep.subr.bf16.mxu1 %v4756_v24  ;;  %4813 = vmatprep.subr.bf16.mxu0 %v5581_v0  ;;  %v643_v17 = vld [vmem:[#allocation10 + $0x320] sm:$0xff] }
 0x24e   :  { %v764_v37 = vpop.f32.mrb[10].mxu0  ;;  %3838 = vmatprep.mubr.msk.f32.mxu0 %vm5582_vm1, %v5583_v1  ;;  %v4862_v22 = vpack.c.bf16 %v644_v18, %v643_v17  ;;  %v1162_v17 = vld [vmem:[#allocation10 + $0x588] sm:$0xff] }
 0x24f   :  { %v3799_v38 = vpop.f32.mrb[11].mxu0  ;;  %3839 = vmatmul.mubr.f32.gmra.mrb[16].mxu0 %v764_v37  ;;  %v667_v37 = vld [vmem:[#allocation10 + $0x3d8] sm:$0xff] }
 0x250   :  { %4759 = vmatpush3.bf16.msra.mxu1 %v4756_v24  ;;  %4815 = vmatpush3.bf16.msra.mxu0 %v4814_v31  ;;  %v662_v24 = vld [vmem:[#allocation10 + $0x3b0] sm:$0xff]  ;;  %v665_v31 = vld [vmem:[#allocation10 + $0x3c8] sm:$0xff]  ;;  %v4895_v38 = vpack.c.bf16 %v1119_v34, %v1118_v33  ;;  %v647_v33 = vld [vmem:[#allocation10 + $0x340] sm:$0xff] }
 0x251   :  { %4761 = vmatprep.subr.bf16.mxu1 %v4760_v32  ;;  %4816 = vmatprep.subr.bf16.mxu0 %v5581_v0  ;;  %v4841_v29 = vpack.c.bf16 %v663_v25, %v662_v24  ;;  %v4844_v35 = vpack.c.bf16 %v665_v31, %v664_v30  ;;  %v645_v25 = vld [vmem:[#allocation10 + $0x330] sm:$0xff]  ;;  %v648_v34 = vld [vmem:[#allocation10 + $0x348] sm:$0xff] }
 0x252   :  { %3873 = vmatprep.mubr.msk.f32.mxu0 %vm5582_vm1, %v5583_v1 }
 0x254   :  { %4763 = vmatpush3.bf16.msra.mxu1 %v4760_v32  ;;  %4818 = vmatpush3.bf16.msra.mxu0 %v4817_v39  ;;  %v4892_v32 = vpack.c.bf16 %v1117_v28, %v1116_v27  ;;  %v4847_v39 = vpack.c.bf16 %v667_v37, %v666_v36  ;;  %v1129_v28 = vld [vmem:[#allocation10 + $0x490] sm:$0xff]  ;;  %v1131_v36 = vld [vmem:[#allocation10 + $0x4a0] sm:$0xff]  ;;  %v1132_v37 = vld [vmem:[#allocation10 + $0x4a8] sm:$0xff] }
 0x255   :  { %4765 = vmatprep.subr.bf16.mxu1 %v4764_v40  ;;  %4819 = vmatprep.subr.bf16.mxu0 %v5581_v0 }
 0x258   :  { %4767 = vmatpush3.bf16.msra.mxu1 %v4764_v40  ;;  %4821 = vmatpush3.bf16.msra.mxu0 %v4820_v45  ;;  %v668_v40 = vld [vmem:[#allocation10 + $0x3e0] sm:$0xff]  ;;  %v4853_v45 = vpack.c.bf16 %v671_v44, %v670_v43  ;;  %v4913_v43 = vpack.c.bf16 %v1132_v37, %v1131_v36  ;;  %v1133_v44 = vld [vmem:[#allocation10 + $0x4b0] sm:$0xff] }
 0x259   :  { %4769 = vmatprep.subr.bf16.mxu1 %v4768_v46  ;;  %4822 = vmatprep.subr.bf16.mxu0 %v5581_v0  ;;  %v4850_v42 = vpack.c.bf16 %v669_v41, %v668_v40  ;;  %v649_v40 = vld [vmem:[#allocation10 + $0x350] sm:$0xff]  ;;  %v650_v41 = vld [vmem:[#allocation10 + $0x358] sm:$0xff] }
 0x25c   :  { %4771 = vmatpush3.bf16.msra.mxu1 %v4768_v46  ;;  %4824 = vmatpush3.bf16.msra.mxu0 %v4823_v51  ;;  %v1120_v46 = vld [vmem:[#allocation10 + $0x450] sm:$0xff]  ;;  %v4901_v51 = vpack.c.bf16 %v1123_v50, %v1122_v49  ;;  %v652_v49 = vld [vmem:[#allocation10 + $0x368] sm:$0xff] }
 0x25d   :  { %4773 = vmatprep.subr.bf16.mxu1 %v4772_v52  ;;  %4825 = vmatprep.subr.bf16.mxu0 %v5581_v0  ;;  %v4898_v48 = vpack.c.bf16 %v1121_v47, %v1120_v46  ;;  %v4871_v46 = vpack.c.bf16 %v650_v41, %v649_v40 }
 0x260   :  { %4775 = vmatpush3.bf16.msra.mxu1 %v4772_v52  ;;  %4827 = vmatpush3.bf16.msra.mxu0 %v4826_v57  ;;  %v1124_v52 = vld [vmem:[#allocation10 + $0x470] sm:$0xff] }
 0x261   :  { %4777 = vmatprep.subr.bf16.mxu1 %v4776_v58  ;;  %4828 = vmatprep.subr.bf16.mxu0 %v5581_v0  ;;  %v4904_v54 = vpack.c.bf16 %v1125_v53, %v1124_v52  ;;  %v1135_v52 = vld [vmem:[#allocation10 + $0x4c0] sm:$0xff]  ;;  %v1136_v53 = vld [vmem:[#allocation10 + $0x4c8] sm:$0xff] }
 0x264   :  { %4779 = vmatpush3.bf16.msra.mxu1 %v4776_v58  ;;  %4830 = vmatpush3.bf16.msra.mxu0 %v4829_v62  ;;  %v639_v62 = vld [vmem:[#allocation10 + $0x300] sm:$0xff] }
 0x265   :  { %4879 = vmatprep.subr.bf16.mxu0 %v5581_v0  ;;  %4831 = vmatprep.subr.bf16.mxu1 %v5581_v0 }
 0x267   :  { %3785 = vmatmul.mubr.f32.vlgmr.msra.gmra.mrb[0].mxu1 %v362_v63  ;;  %3874 = vmatmul.mubr.f32.vlgmr.msra.gmra.mrb[18].mxu0 %v5739_v3  ;;  %v640_v63 = vld [vmem:[#allocation10 + $0x308] sm:$0xff] }
 0x268   :  { %3876 = vmatprep.mubr.msk.f32.mxu0 %vm5582_vm1, %v5583_v1  ;;  %4881 = vmatpush3.bf16.msra.mxu0 %v5746_v6  ;;  %v117_v6 = vld [vmem:[#allocation8] sm:$0xff]  ;;  %v4856_v5 = vpack.c.bf16 %v640_v63, %v639_v62  ;;  %v1137_v62 = vld [vmem:[#allocation10 + $0x4d0] sm:$0xff]  ;;  %v1138_v63 = vld [vmem:[#allocation10 + $0x4d8] sm:$0xff] }
 0x269   :  { %3968 = vmatprep.subr.mxu0 %v5583_v1  ;;  %3914 = vmatprep.mubr.msk.f32.mxu1 %vm5582_vm1, %v5583_v1 }
 0x26a   :  { %4833 = vmatpush3.bf16.msra.mxu1 %v4832_v9 }
 0x26b   :  { %3877 = vmatmul.mubr.f32.gmra.mrb[20].mxu0 %v5741_v4  ;;  %4834 = vmatprep.subr.bf16.mxu1 %v5581_v0 }
 0x26c   :  { %3879 = vmatprep.mubr.msk.f32.mxu0 %vm5582_vm1, %v5583_v1  ;;  %3969 = vmatpush3.msra.mxu0 %v5748_v7 }
 0x26d   :  { %4882 = vmatprep.subr.bf16.mxu0 %v5581_v0 }
 0x26e   :  { %4836 = vmatpush3.bf16.msra.mxu1 %v4835_v14  ;;  %v4859_v14 = vpack.c.bf16 %v642_v12, %v641_v11 }
 0x26f   :  { %3880 = vmatmul.mubr.f32.gmra.mrb[22].mxu0 %v5748_v7  ;;  %4837 = vmatprep.subr.bf16.mxu1 %v5581_v0 }
 0x270   :  { %3970 = vmatprep.mubr.msk.f32.mxu0 %vm5582_vm1, %v5583_v1 }
 0x272   :  { %4839 = vmatpush3.bf16.msra.mxu1 %v4838_v23 }
 0x273   :  { %3971 = vmatmul.mubr.msk.f32.vlgmr.msra.gmra.mrb[24].mxu0 %vm202_vm0, %v117_v6  ;;  %4840 = vmatprep.subr.bf16.mxu1 %v5581_v0  ;;  %v3133_v6 = vld [vmem:[#allocation11 + $0x4] ss:$0 sm:$0xff] }
 0x274   :  { %3973 = vmatprep.mubr.msk.f32.mxu0 %vm5582_vm1, %v5583_v1  ;;  %4884 = vmatpush3.bf16.msra.mxu0 %v4883_v15 }
 0x275   :  { %4885 = vmatprep.subr.bf16.mxu0 %v5581_v0 }
 0x276   :  { %4842 = vmatpush3.bf16.msra.mxu1 %v4841_v29  ;;  %v1130_v29 = vld [vmem:[#allocation10 + $0x498] sm:$0xff] }
 0x277   :  { %3974 = vmatmul.mubr.msk.f32.gmra.mrb[26].mxu0 %vm202_vm0, %v118_v60  ;;  %4843 = vmatprep.subr.bf16.mxu1 %v5581_v0 }
 0x278   :  { %3976 = vmatprep.mubr.msk.f32.mxu0 %vm5582_vm1, %v5583_v1  ;;  %4887 = vmatpush3.bf16.msra.mxu0 %v4886_v20  ;;  %v1128_v20 = vld [vmem:[#allocation10 + $0x488] sm:$0xff] }
 0x279   :  { %4888 = vmatprep.subr.bf16.mxu0 %v5581_v0  ;;  %v4907_v27 = vpack.c.bf16 %v1128_v20, %v1127_v19  ;;  %v1163_v19 = vld [vmem:[#allocation10 + $0x590] sm:$0xff]  ;;  %v1164_v20 = vld [vmem:[#allocation10 + $0x598] sm:$0xff] }
 0x27a   :  { %4845 = vmatpush3.bf16.msra.mxu1 %v4844_v35  ;;  %v4910_v35 = vpack.c.bf16 %v1130_v29, %v1129_v28  ;;  %v1171_v28 = vld [vmem:[#allocation10 + $0x5d0] sm:$0xff]  ;;  %v1172_v29 = vld [vmem:[#allocation10 + $0x5d8] sm:$0xff] }
 0x27b   :  { %3977 = vmatmul.mubr.msk.f32.gmra.mrb[28].mxu0 %vm202_vm0, %v119_v2  ;;  %4846 = vmatprep.subr.bf16.mxu1 %v5581_v0 }
 0x27c   :  { %4011 = vmatprep.mubr.msk.f32.mxu0 %vm5582_vm1, %v5583_v1  ;;  %4890 = vmatpush3.bf16.msra.mxu0 %v4889_v26  ;;  %v646_v26 = vld [vmem:[#allocation10 + $0x338] sm:$0xff] }
 0x27d   :  { %4891 = vmatprep.subr.bf16.mxu0 %v5581_v0  ;;  %v4865_v31 = vpack.c.bf16 %v646_v26, %v645_v25  ;;  %v1169_v25 = vld [vmem:[#allocation10 + $0x5c0] sm:$0xff]  ;;  %v1170_v26 = vld [vmem:[#allocation10 + $0x5c8] sm:$0xff] }
 0x27e   :  { %4848 = vmatpush3.bf16.msra.mxu1 %v4847_v39 }
 0x27f   :  { %4849 = vmatprep.subr.bf16.mxu1 %v5581_v0 }
 0x280   :  { %4893 = vmatpush3.bf16.msra.mxu0 %v4892_v32 }
 0x281   :  { %4894 = vmatprep.subr.bf16.mxu0 %v5581_v0 }
 0x282   :  { %4851 = vmatpush3.bf16.msra.mxu1 %v4850_v42 }
 0x283   :  { %4852 = vmatprep.subr.bf16.mxu1 %v5581_v0 }
 0x284   :  { %4896 = vmatpush3.bf16.msra.mxu0 %v4895_v38  ;;  %v4868_v38 = vpack.c.bf16 %v648_v34, %v647_v33  ;;  %v1175_v34 = vld [vmem:[#allocation10 + $0x5f0] sm:$0xff] }
 0x285   :  { %4897 = vmatprep.subr.bf16.mxu0 %v5581_v0 }
 0x286   :  { %4854 = vmatpush3.bf16.msra.mxu1 %v4853_v45  ;;  %v1134_v45 = vld [vmem:[#allocation10 + $0x4b8] sm:$0xff] }
 0x287   :  { %4855 = vmatprep.subr.bf16.mxu1 %v5581_v0 }
 0x288   :  { %4899 = vmatpush3.bf16.msra.mxu0 %v4898_v48  ;;  %v651_v48 = vld [vmem:[#allocation10 + $0x360] sm:$0xff] }
 0x289   :  { %4900 = vmatprep.subr.bf16.mxu0 %v5581_v0 }
 0x28c   :  { %4902 = vmatpush3.bf16.msra.mxu0 %v4901_v51  ;;  %v4916_v51 = vpack.c.bf16 %v1134_v45, %v1133_v44  ;;  %v1145_v44 = vld [vmem:[#allocation10 + $0x508] sm:$0xff]  ;;  %v3139_v45 = vld [vmem:[#allocation11 + $0x7] ss:$0 sm:$0xff] }
 0x28d   :  { %4903 = vmatprep.subr.bf16.mxu0 %v5581_v0 }
 0x290   :  { %4905 = vmatpush3.bf16.msra.mxu0 %v4904_v54  ;;  %v4874_v54 = vpack.c.bf16 %v652_v49, %v651_v48 }
 0x291   :  { %4906 = vmatprep.subr.bf16.mxu0 %v5581_v0 }
 0x31a   :  { %v5847_v55 = vpop.f32.mrb[12].mxu0 }
 0x31b   :  { %v3834_v56 = vpop.f32.mrb[13].mxu0 }
 0x31c   :  { %v653_v56 = vld [vmem:[#allocation10 + $0x370] sm:$0xff] }
 0x31e   :  { %v5849_v57 = vpop.f32.mrb[14].mxu0 }
 0x31f   :  { %v3837_v58 = vpop.f32.mrb[15].mxu0 }
 0x320   :  { %v654_v58 = vld [vmem:[#allocation10 + $0x378] sm:$0xff] }
 0x322   :  { %v5851_v59 = vpop.f32.mrb[16].mxu0 }
 0x323   :  { %v3840_v61 = vpop.f32.mrb[17].mxu0 }
 0x324   :  { %v4919_v61 = vpack.c.bf16 %v1136_v53, %v1135_v52 }
 0x33a   :  { %v5853_v60 = vpop.f32.mrb[0].mxu1  ;;  %v926_v2 = vpop.f32.mrb[18].mxu0 }
 0x33b   :  { %v927_v8 = vadd.f32 %v3133_v6, %v926_v2  ;;  %v5855_v9 = vpop.f32.mrb[1].mxu1  ;;  %v3875_v10 = vpop.f32.mrb[19].mxu0  ;;  %v3132_v2 = vld [vmem:[#allocation11 + $0x3] ss:$0 sm:$0xff] }
 0x33c   :  { %v1140_v10 = vld [vmem:[#allocation10 + $0x4e8] sm:$0xff]  ;;  %v841_v11 = vadd.f32 %v3132_v2, %v5847_v55  ;;  %v851_v55 = vadd.f32 %v3132_v2, %v5851_v59  ;;  %v1161_v59 = vld [vmem:[#allocation10 + $0x580] sm:$0xff] }
 0x33d   :  { %3915 = vmatmul.mubr.f32.vlgmr.msra.gmra.mrb[2].mxu1 %v927_v8  ;;  %v1139_v8 = vld [vmem:[#allocation10 + $0x4e0] sm:$0xff]  ;;  %v4931_v18 = vpack.c.bf16 %v1162_v17, %v1161_v59  ;;  %v1158_v17 = vld [vmem:[#allocation10 + $0x570] sm:$0xff] }
 0x33e   :  { %4857 = vmatpush3.bf16.msra.mxu1 %v4856_v5  ;;  %v931_v13 = vpop.f32.mrb[20].mxu0  ;;  %3917 = vmatprep.mubr.msk.f32.mxu1 %vm5582_vm1, %v5583_v1  ;;  %v4922_v5 = vpack.c.bf16 %v1138_v63, %v1137_v62  ;;  %v4925_v12 = vpack.c.bf16 %v1140_v10, %v1139_v8 }
 0x33f   :  { %v932_v15 = vadd.f32 %v3133_v6, %v931_v13  ;;  %v3878_v16 = vpop.f32.mrb[21].mxu0  ;;  %4858 = vmatprep.subr.bf16.mxu1 %v5581_v0  ;;  %v1141_v13 = vld [vmem:[#allocation10 + $0x4f0] sm:$0xff] }
 0x341   :  { %3918 = vmatmul.mubr.f32.gmra.mrb[4].mxu1 %v932_v15  ;;  %v846_v15 = vadd.f32 %v3132_v2, %v5849_v57  ;;  %v5375_v57 = vld [vmem:[#allocation7] sm:$0xff] }
 0x342   :  { %4860 = vmatpush3.bf16.msra.mxu1 %v4859_v14  ;;  %v936_v21 = vpop.f32.mrb[22].mxu0  ;;  %3920 = vmatprep.mubr.msk.f32.mxu1 %vm5582_vm1, %v5583_v1  ;;  %v1142_v14 = vld [vmem:[#allocation10 + $0x4f8] sm:$0xff] }
 0x343   :  { %v937_v23 = vadd.f32 %v3133_v6, %v936_v21  ;;  %v3881_v24 = vpop.f32.mrb[23].mxu0  ;;  %4861 = vmatprep.subr.bf16.mxu1 %v5581_v0  ;;  %v4877_v6 = vpack.c.bf16 %v654_v58, %v653_v56  ;;  %v4928_v16 = vpack.c.bf16 %v1142_v14, %v1141_v13  ;;  %v1165_v21 = vld [vmem:[#allocation10 + $0x5a0] sm:$0xff]  ;;  %v1149_v56 = vld [vmem:[#allocation10 + $0x528] sm:$0xff]  ;;  %v1151_v2 = vld [vmem:[#allocation10 + $0x538] sm:$0xff] }
 0x344   :  { %v1154_v14 = vld [vmem:[#allocation10 + $0x550] sm:$0xff] }
 0x345   :  { %3921 = vmatmul.mubr.f32.gmra.mrb[6].mxu1 %v937_v23  ;;  %v1167_v23 = vld [vmem:[#allocation10 + $0x5b0] sm:$0xff] }
 0x346   :  { %4863 = vmatpush3.bf16.msra.mxu1 %v4862_v22  ;;  %v1258_v30 = vpop.f32.mrb[24].mxu0  ;;  %3955 = vmatprep.mubr.msk.f32.mxu1 %vm5582_vm1, %v5583_v1  ;;  %v1166_v22 = vld [vmem:[#allocation10 + $0x5a8] sm:$0xff] }
 0x347   :  { %v3972_v32 = vpop.f32.mrb[25].mxu0  ;;  %4012 = vmatmul.mubr.f32.vlgmr.msra.gmra.mrb[30].mxu0 %v1258_v30  ;;  %4864 = vmatprep.subr.bf16.mxu1 %v5581_v0  ;;  %v4946_v30 = vpack.c.bf16 %v1172_v29, %v1171_v28 }
 0x348   :  { %4908 = vmatpush3.bf16.msra.mxu0 %v4907_v27  ;;  %4014 = vmatprep.mubr.msk.f32.mxu0 %vm5582_vm1, %v5583_v1  ;;  %v4943_v27 = vpack.c.bf16 %v1170_v26, %v1169_v25  ;;  %v1174_v32 = vld [vmem:[#allocation10 + $0x5e8] sm:$0xff]  ;;  %v1643_v25 = vld [vmem:[#allocation10 + $0x6a0] sm:$0xff] }
 0x349   :  { %4909 = vmatprep.subr.bf16.mxu0 %v5581_v0  ;;  %v1644_v26 = vld [vmem:[#allocation10 + $0x6a8] sm:$0xff] }
 0x34a   :  { %4866 = vmatpush3.bf16.msra.mxu1 %v4865_v31  ;;  %v1263_v39 = vpop.f32.mrb[26].mxu0  ;;  %v1173_v31 = vld [vmem:[#allocation10 + $0x5e0] sm:$0xff]  ;;  %v5022_v29 = vpack.c.bf16 %v1644_v26, %v1643_v25  ;;  %v1635_v25 = vld [vmem:[#allocation10 + $0x668] sm:$0xff] }
 0x34b   :  { %4867 = vmatprep.subr.bf16.mxu1 %v5581_v0  ;;  %v3975_v42 = vpop.f32.mrb[27].mxu0  ;;  %4015 = vmatmul.mubr.f32.gmra.mrb[32].mxu0 %v1263_v39  ;;  %v4949_v33 = vpack.c.bf16 %v1174_v32, %v1173_v31  ;;  %v1645_v31 = vld [vmem:[#allocation10 + $0x6b0] sm:$0xff]  ;;  %v1646_v32 = vld [vmem:[#allocation10 + $0x6b8] sm:$0xff] }
 0x34c   :  { %4911 = vmatpush3.bf16.msra.mxu0 %v4910_v35  ;;  %4017 = vmatprep.mubr.msk.f32.mxu0 %vm5582_vm1, %v5583_v1  ;;  %v1176_v35 = vld [vmem:[#allocation10 + $0x5f8] sm:$0xff] }
 0x34d   :  { %4912 = vmatprep.subr.bf16.mxu0 %v5581_v0  ;;  %v4952_v36 = vpack.c.bf16 %v1176_v35, %v1175_v34  ;;  %v5026_v34 = vpack.c.bf16 %v1646_v32, %v1645_v31  ;;  %v1673_v32 = vld [vmem:[#allocation10 + $0x780] sm:$0xff] }
 0x34e   :  { %4869 = vmatpush3.bf16.msra.mxu1 %v4868_v38  ;;  %v1268_v47 = vpop.f32.mrb[28].mxu0 }
 0x34f   :  { %4870 = vmatprep.subr.bf16.mxu1 %v5581_v0  ;;  %v3978_v50 = vpop.f32.mrb[29].mxu0  ;;  %4018 = vmatmul.mubr.f32.gmra.mrb[34].mxu0 %v1268_v47 }
 0x350   :  { %4914 = vmatpush3.bf16.msra.mxu0 %v4913_v43  ;;  %4052 = vmatprep.mubr.msk.f32.mxu0 %vm5582_vm1, %v5583_v1  ;;  %v1144_v43 = vld [vmem:[#allocation10 + $0x500] sm:$0xff]  ;;  %v1146_v50 = vld [vmem:[#allocation10 + $0x510] sm:$0xff] }
 0x351   :  { %4915 = vmatprep.subr.bf16.mxu0 %v5581_v0  ;;  %v4955_v47 = vpack.c.bf16 %v1145_v44, %v1144_v43  ;;  %v1653_v44 = vld [vmem:[#allocation10 + $0x6f0] sm:$0xff] }
 0x352   :  { %4872 = vmatpush3.bf16.msra.mxu1 %v4871_v46 }
 0x353   :  { %4873 = vmatprep.subr.bf16.mxu1 %v5581_v0 }
 0x354   :  { %4917 = vmatpush3.bf16.msra.mxu0 %v4916_v51  ;;  %v1147_v51 = vld [vmem:[#allocation10 + $0x518] sm:$0xff] }
 0x355   :  { %4918 = vmatprep.subr.bf16.mxu0 %v5581_v0  ;;  %v4958_v52 = vpack.c.bf16 %v1147_v51, %v1146_v50  ;;  %v3140_v50 = vld [vmem:[#allocation11 + $0x8] ss:$0 sm:$0xff] }
 0x356   :  { %4875 = vmatpush3.bf16.msra.mxu1 %v4874_v54  ;;  %v1148_v54 = vld [vmem:[#allocation10 + $0x520] sm:$0xff] }
 0x357   :  { %4876 = vmatprep.subr.bf16.mxu1 %v5581_v0  ;;  %v4961_v62 = vpack.c.bf16 %v1149_v56, %v1148_v54 }
 0x358   :  { %4920 = vmatpush3.bf16.msra.mxu0 %v4919_v61 }
 0x359   :  { %4921 = vmatprep.subr.bf16.mxu0 %v5581_v0 }
 0x35a   :  { %4878 = vmatpush3.bf16.msra.mxu1 %v4877_v6  ;;  %v1150_v6 = vld [vmem:[#allocation10 + $0x530] sm:$0xff] }
 0x35b   :  { %4930 = vmatprep.subr.bf16.mxu1 %v5581_v0  ;;  %v4964_v10 = vpack.c.bf16 %v1151_v2, %v1150_v6 }
 0x35c   :  { %4923 = vmatpush3.bf16.msra.mxu0 %v4922_v5 }
 0x35d   :  { %3956 = vmatmul.mubr.f32.vlgmr.msra.gmra.mrb[2].mxu1 %v841_v11  ;;  %4924 = vmatprep.subr.bf16.mxu0 %v5581_v0  ;;  %v1152_v11 = vld [vmem:[#allocation10 + $0x540] sm:$0xff] }
 0x35e   :  { %3958 = vmatprep.mubr.msk.f32.mxu1 %vm5582_vm1, %v5583_v1  ;;  %4932 = vmatpush3.bf16.msra.mxu1 %v4931_v18  ;;  %v1159_v18 = vld [vmem:[#allocation10 + $0x578] sm:$0xff] }
 0x35f   :  { %4933 = vmatprep.subr.bf16.mxu1 %v5581_v0 }
 0x360   :  { %4926 = vmatpush3.bf16.msra.mxu0 %v4925_v12  ;;  %v1153_v12 = vld [vmem:[#allocation10 + $0x548] sm:$0xff] }
 0x361   :  { %3959 = vmatmul.mubr.f32.gmra.mrb[4].mxu1 %v846_v15  ;;  %4927 = vmatprep.subr.bf16.mxu0 %v5581_v0  ;;  %v4967_v13 = vpack.c.bf16 %v1153_v12, %v1152_v11  ;;  %v1155_v15 = vld [vmem:[#allocation10 + $0x558] sm:$0xff]  ;;  %v1624_v12 = vld [vmem:[#allocation10 + $0x610] sm:$0xff] }
 0x362   :  { %3961 = vmatprep.mubr.msk.f32.mxu1 %vm5582_vm1, %v5583_v1 }
 0x364   :  { %4929 = vmatpush3.bf16.msra.mxu0 %v4928_v16  ;;  %v4970_v16 = vpack.c.bf16 %v1155_v15, %v1154_v14 }
 0x365   :  { %3962 = vmatmul.mubr.f32.gmra.mrb[6].mxu1 %v851_v55  ;;  %v1156_v55 = vld [vmem:[#allocation10 + $0x560] sm:$0xff] }
 0x366   :  { %4093 = vmatprep.mubr.msk.f32.mxu1 %vm5582_vm1, %v5583_v1 }
 0x367   :  { %4053 = vmatmul.mubr.f32.vlgmr.msra.gmra.mrb[36].mxu0 %v5739_v3  ;;  %v4934_v3 = vpack.c.bf16 %v1164_v20, %v1163_v19  ;;  %v1639_v19 = vld [vmem:[#allocation10 + $0x680] sm:$0xff]  ;;  %v1640_v20 = vld [vmem:[#allocation10 + $0x688] sm:$0xff] }
 0x368   :  { %4055 = vmatprep.mubr.msk.f32.mxu0 %vm5582_vm1, %v5583_v1 }
 0x369   :  { %4935 = vmatpush3.bf16.msra.mxu1 %v4934_v3  ;;  %v4976_v3 = vpack.c.bf16 %v1159_v18, %v1158_v17  ;;  %v1628_v17 = vld [vmem:[#allocation10 + $0x630] sm:$0xff]  ;;  %v1629_v18 = vld [vmem:[#allocation10 + $0x638] sm:$0xff] }
 0x36a   :  { %4936 = vmatprep.subr.bf16.mxu1 %v5581_v0 }
 0x36b   :  { %4056 = vmatmul.mubr.f32.gmra.mrb[38].mxu0 %v5741_v4  ;;  %v4937_v4 = vpack.c.bf16 %v1166_v22, %v1165_v21  ;;  %v5014_v21 = vpack.c.bf16 %v1640_v20, %v1639_v19  ;;  %v3138_v22 = vld [vmem:[#allocation11 + $0x6] ss:$0 sm:$0xff]  ;;  %v4994_v19 = vpack.c.bf16 %v1629_v18, %v1628_v17  ;;  %v1662_v18 = vld [vmem:[#allocation10 + $0x730] sm:$0xff] }
 0x36c   :  { %4058 = vmatprep.mubr.msk.f32.mxu0 %vm5582_vm1, %v5583_v1  ;;  %v1630_v20 = vld [vmem:[#allocation10 + $0x640] sm:$0xff] }
 0x36d   :  { %4938 = vmatpush3.bf16.msra.mxu1 %v4937_v4  ;;  %v1641_v4 = vld [vmem:[#allocation10 + $0x690] sm:$0xff] }
 0x36e   :  { %4939 = vmatprep.subr.bf16.mxu1 %v5581_v0 }
 0x36f   :  { %4059 = vmatmul.mubr.f32.gmra.mrb[40].mxu0 %v5748_v7  ;;  %v1168_v7 = vld [vmem:[#allocation10 + $0x5b8] sm:$0xff] }
 0x370   :  { %4149 = vmatprep.mubr.msk.f32.mxu0 %vm202_vm0, %v5375_v57  ;;  %v4940_v24 = vpack.c.bf16 %v1168_v7, %v1167_v23  ;;  %v1157_v57 = vld [vmem:[#allocation10 + $0x568] sm:$0xff]  ;;  %v1642_v23 = vld [vmem:[#allocation10 + $0x698] sm:$0xff] }
 0x371   :  { %v4973_v59 = vpack.c.bf16 %v1157_v57, %v1156_v55  ;;  %v1627_v55 = vld [vmem:[#allocation10 + $0x628] sm:$0xff]  ;;  %v5376_v57 = vld [vmem:[#allocation7 + $0x8] sm:$0xff] }
 0x372   :  { %4941 = vmatpush3.bf16.msra.mxu1 %v4940_v24  ;;  %v5018_v24 = vpack.c.bf16 %v1642_v23, %v1641_v4  ;;  %v1633_v4 = vld [vmem:[#allocation10 + $0x658] sm:$0xff] }
 0x373   :  { %4942 = vmatprep.subr.bf16.mxu1 %v5581_v0 }
 0x376   :  { %4944 = vmatpush3.bf16.msra.mxu1 %v4943_v27  ;;  %v3128_v27 = vld [vmem:[#allocation11 + $0x2] ss:$0 sm:$0xff] }
 0x377   :  { %4945 = vmatprep.subr.bf16.mxu1 %v5581_v0 }
 0x37a   :  { %4947 = vmatpush3.bf16.msra.mxu1 %v4946_v30  ;;  %v5933_v30 = vadd.f32 %v3128_v27, %v5855_v9 }
 0x37b   :  { %4948 = vmatprep.subr.bf16.mxu1 %v5581_v0 }
 0x37c   :  { %v1616_v35 = vmax.f32 %v5933_v30, 0.0 }
 0x37e   :  { %4950 = vmatpush3.bf16.msra.mxu1 %v4949_v33 }
 0x37f   :  { %4951 = vmatprep.subr.bf16.mxu1 %v5581_v0 }
 0x382   :  { %4953 = vmatpush3.bf16.msra.mxu1 %v4952_v36  ;;  %v1647_v36 = vld [vmem:[#allocation10 + $0x6c0] sm:$0xff] }
 0x383   :  { %4954 = vmatprep.subr.bf16.mxu1 %v5581_v0 }
 0x41a   :  { %v5909_v37 = vpop.f32.mrb[30].mxu0 }
 0x41b   :  { %v4013_v38 = vpop.f32.mrb[31].mxu0  ;;  %v1345_v7 = vadd.f32 %v3138_v22, %v5909_v37  ;;  %v1648_v37 = vld [vmem:[#allocation10 + $0x6c8] sm:$0xff] }
 0x41c   :  { %v5030_v9 = vpack.c.bf16 %v1648_v37, %v1647_v36  ;;  %v1649_v38 = vld [vmem:[#allocation10 + $0x6d0] sm:$0xff]  ;;  %v1676_v37 = vld [vmem:[#allocation10 + $0x798] sm:$0xff] }
 0x41d   :  { %v1675_v36 = vld [vmem:[#allocation10 + $0x790] sm:$0xff] }
 0x41e   :  { %v5911_v39 = vpop.f32.mrb[32].mxu0 }
 0x41f   :  { %v4016_v40 = vpop.f32.mrb[33].mxu0  ;;  %v1350_v28 = vadd.f32 %v3138_v22, %v5911_v39  ;;  %v1650_v39 = vld [vmem:[#allocation10 + $0x6d8] sm:$0xff] }
 0x420   :  { %v5034_v40 = vpack.c.bf16 %v1650_v39, %v1649_v38 }
 0x422   :  { %v5913_v41 = vpop.f32.mrb[34].mxu0 }
 0x423   :  { %v4019_v42 = vpop.f32.mrb[35].mxu0  ;;  %v1355_v33 = vadd.f32 %v3138_v22, %v5913_v41  ;;  %v1652_v41 = vld [vmem:[#allocation10 + $0x6e8] sm:$0xff]  ;;  %v1632_v22 = vld [vmem:[#allocation10 + $0x650] sm:$0xff] }
 0x424   :  { %v1651_v42 = vld [vmem:[#allocation10 + $0x6e0] sm:$0xff]  ;;  %v5002_v23 = vpack.c.bf16 %v1633_v4, %v1632_v22  ;;  %v1666_v4 = vld [vmem:[#allocation10 + $0x750] sm:$0xff] }
 0x425   :  { %v5038_v43 = vpack.c.bf16 %v1652_v41, %v1651_v42  ;;  %v1677_v41 = vld [vmem:[#allocation10 + $0x7a0] sm:$0xff] }
 0x43a   :  { %v1430_v46 = vpop.f32.mrb[36].mxu0 }
 0x43b   :  { %v1431_v48 = vadd.f32 %v3139_v45, %v1430_v46  ;;  %v4054_v49 = vpop.f32.mrb[37].mxu0 }
 0x43c   :  { %v3134_v49 = vld [vmem:[#allocation11 + $0x5] ss:$0 sm:$0xff] }
 0x43d   :  { %4094 = vmatmul.mubr.f32.vlgmr.msra.gmra.mrb[2].mxu1 %v1431_v48  ;;  %v5308_v51 = vadd.f32 %v3140_v50, %v3134_v49  ;;  %v1681_v50 = vld [vmem:[#allocation10 + $0x7c0] sm:$0xff] }
 0x43e   :  { %4956 = vmatpush3.bf16.msra.mxu1 %v4955_v47  ;;  %v1435_v53 = vpop.f32.mrb[38].mxu0  ;;  %4096 = vmatprep.mubr.msk.f32.mxu1 %vm5582_vm1, %v5583_v1  ;;  %v5942_v47 = vadd.f32 %v5853_v60, %v3128_v27 }
 0x43f   :  { %4957 = vmatprep.subr.bf16.mxu1 %v5581_v0  ;;  %v1436_v58 = vadd.f32 %v3139_v45, %v1435_v53  ;;  %v4057_v61 = vpop.f32.mrb[39].mxu0 }
 0x440   :  { %v1617_v48 = vmax.f32 %v5942_v47, 0.0  ;;  %v2113_v47 = vld [vmem:[#allocation10 + $0x8a8] sm:$0xff] }
 0x441   :  { %4097 = vmatmul.mubr.f32.gmra.mrb[4].mxu1 %v1436_v58 }
 0x442   :  { %4959 = vmatpush3.bf16.msra.mxu1 %v4958_v52  ;;  %v1440_v63 = vpop.f32.mrb[40].mxu0  ;;  %4099 = vmatprep.mubr.msk.f32.mxu1 %vm5582_vm1, %v5583_v1 }
 0x443   :  { %4960 = vmatprep.subr.bf16.mxu1 %v5581_v0  ;;  %v1441_v5 = vadd.f32 %v3139_v45, %v1440_v63  ;;  %v4060_v8 = vpop.f32.mrb[41].mxu0  ;;  %v1654_v45 = vld [vmem:[#allocation10 + $0x6f8] sm:$0xff] }
 0x444   :  { %v5042_v46 = vpack.c.bf16 %v1654_v45, %v1653_v44  ;;  %v1622_v8 = vld [vmem:[#allocation10 + $0x600] sm:$0xff]  ;;  %v1679_v45 = vld [vmem:[#allocation10 + $0x7b0] sm:$0xff] }
 0x445   :  { %4100 = vmatmul.mubr.f32.gmra.mrb[6].mxu1 %v1441_v5 }
 0x446   :  { %4962 = vmatpush3.bf16.msra.mxu1 %v4961_v62  ;;  %4134 = vmatprep.mubr.msk.f32.mxu1 %vm5582_vm1, %v5583_v1 }
 0x447   :  { %4963 = vmatprep.subr.bf16.mxu1 %v5581_v0 }
 0x44a   :  { %4965 = vmatpush3.bf16.msra.mxu1 %v4964_v10  ;;  %v1623_v10 = vld [vmem:[#allocation10 + $0x608] sm:$0xff] }
 0x44b   :  { %4966 = vmatprep.subr.bf16.mxu1 %v5581_v0  ;;  %v4982_v14 = vpack.c.bf16 %v1623_v10, %v1622_v8  ;;  %v1656_v10 = vld [vmem:[#allocation10 + $0x700] sm:$0xff] }
 0x44e   :  { %4968 = vmatpush3.bf16.msra.mxu1 %v4967_v13  ;;  %v1625_v13 = vld [vmem:[#allocation10 + $0x618] sm:$0xff] }
 0x44f   :  { %4969 = vmatprep.subr.bf16.mxu1 %v5581_v0  ;;  %v4986_v15 = vpack.c.bf16 %v1625_v13, %v1624_v12  ;;  %v1657_v12 = vld [vmem:[#allocation10 + $0x708] sm:$0xff] }
 0x450   :  { %v5078_v13 = vpack.c.bf16 %v1657_v12, %v1656_v10  ;;  %v2110_v12 = vld [vmem:[#allocation10 + $0x890] sm:$0xff] }
 0x452   :  { %4971 = vmatpush3.bf16.msra.mxu1 %v4970_v16  ;;  %v1626_v16 = vld [vmem:[#allocation10 + $0x620] sm:$0xff] }
 0x453   :  { %4972 = vmatprep.subr.bf16.mxu1 %v5581_v0 }
 0x456   :  { %4974 = vmatpush3.bf16.msra.mxu1 %v4973_v59  ;;  %v4990_v59 = vpack.c.bf16 %v1627_v55, %v1626_v16 }
 0x457   :  { %4975 = vmatprep.subr.bf16.mxu1 %v5581_v0 }
 0x45a   :  { %4977 = vmatpush3.bf16.msra.mxu1 %v4976_v3  ;;  %v1631_v3 = vld [vmem:[#allocation10 + $0x648] sm:$0xff] }
 0x45b   :  { %5015 = vmatprep.subr.bf16.mxu1 %v5014_v21 }
 0x45d   :  { %4135 = vmatmul.mubr.f32.vlgmr.msra.gmra.mrb[2].mxu1 %v1345_v7 }
 0x45e   :  { %5017 = vmatpush3.bf16.msra.mxu1 %v5014_v21  ;;  %4137 = vmatprep.mubr.msk.f32.mxu1 %vm5582_vm1, %v5583_v1  ;;  %v4998_v21 = vpack.c.bf16 %v1631_v3, %v1630_v20  ;;  %v1664_v3 = vld [vmem:[#allocation10 + $0x740] sm:$0xff] }
 0x45f   :  { %5019 = vmatprep.subr.bf16.mxu1 %v5018_v24 }
 0x461   :  { %4138 = vmatmul.mubr.f32.gmra.mrb[4].mxu1 %v1350_v28  ;;  %v1636_v28 = vld [vmem:[#allocation10 + $0x670] sm:$0xff] }
 0x462   :  { %5021 = vmatpush3.bf16.msra.mxu1 %v5018_v24  ;;  %4140 = vmatprep.mubr.msk.f32.mxu1 %vm5582_vm1, %v5583_v1  ;;  %v1634_v24 = vld [vmem:[#allocation10 + $0x660] sm:$0xff] }
 0x463   :  { %5023 = vmatprep.subr.bf16.mxu1 %v5022_v29  ;;  %v5006_v27 = vpack.c.bf16 %v1635_v25, %v1634_v24  ;;  %v1668_v24 = vld [vmem:[#allocation10 + $0x760] sm:$0xff]  ;;  %v1669_v25 = vld [vmem:[#allocation10 + $0x768] sm:$0xff] }
 0x465   :  { %4141 = vmatmul.mubr.f32.gmra.mrb[6].mxu1 %v1355_v33  ;;  %v1674_v33 = vld [vmem:[#allocation10 + $0x788] sm:$0xff] }
 0x466   :  { %5025 = vmatpush3.bf16.msra.mxu1 %v5022_v29  ;;  %4219 = vmatprep.mubr.f32.mxu1 %v1616_v35  ;;  %v1637_v29 = vld [vmem:[#allocation10 + $0x678] sm:$0xff] }
 0x467   :  { %5027 = vmatprep.subr.bf16.mxu1 %v5026_v34  ;;  %v5010_v31 = vpack.c.bf16 %v1637_v29, %v1636_v28  ;;  %v1671_v28 = vld [vmem:[#allocation10 + $0x778] sm:$0xff] }
 0x46a   :  { %5029 = vmatpush3.bf16.msra.mxu1 %v5026_v34  ;;  %v5046_v34 = vpack.c.bf16 %v1674_v33, %v1673_v32  ;;  %v2092_v32 = vld [vmem:[#allocation10 + $0x808] sm:$0xff]  ;;  %v2093_v33 = vld [vmem:[#allocation10 + $0x810] sm:$0xff] }
 0x46b   :  { %5031 = vmatprep.subr.bf16.mxu1 %v5030_v9 }
 0x46e   :  { %5033 = vmatpush3.bf16.msra.mxu1 %v5030_v9  ;;  %v3144_v9 = vld [vmem:[#allocation11 + $0xa] ss:$0 sm:$0xff] }
 0x46f   :  { %5035 = vmatprep.subr.bf16.mxu1 %v5034_v40 }
 0x472   :  { %5037 = vmatpush3.bf16.msra.mxu1 %v5034_v40  ;;  %v5050_v40 = vpack.c.bf16 %v1676_v37, %v1675_v36  ;;  %v2094_v36 = vld [vmem:[#allocation10 + $0x818] sm:$0xff] }
 0x473   :  { %5039 = vmatprep.subr.bf16.mxu1 %v5038_v43  ;;  %v5117_v37 = vpack.c.bf16 %v2094_v36, %v2093_v33  ;;  %v2142_v33 = vld [vmem:[#allocation10 + $0x980] sm:$0xff] }
 0x476   :  { %5041 = vmatpush3.bf16.msra.mxu1 %v5038_v43  ;;  %v1678_v43 = vld [vmem:[#allocation10 + $0x7a8] sm:$0xff] }
 0x477   :  { %5043 = vmatprep.subr.bf16.mxu1 %v5042_v46  ;;  %v5054_v44 = vpack.c.bf16 %v1678_v43, %v1677_v41  ;;  %v2099_v43 = vld [vmem:[#allocation10 + $0x840] sm:$0xff] }
 0x47a   :  { %5045 = vmatpush3.bf16.msra.mxu1 %v5042_v46  ;;  %v1680_v46 = vld [vmem:[#allocation10 + $0x7b8] sm:$0xff] }
 0x47b   :  { %5113 = vmatprep.subr.bf16.mxu1 %v5581_v0  ;;  %v5058_v49 = vpack.c.bf16 %v1680_v46, %v1679_v45  ;;  %v2101_v46 = vld [vmem:[#allocation10 + $0x850] sm:$0xff] }
 0x47d   :  { %4220 = vmatmul.mubr.f32.vlgmr.msra.gmra.mrb[8].mxu1 %v1617_v48 }
 0x47e   :  { %4337 = vmatprep.mubr.msk.f32.mxu1 %vm5582_vm1, %v5583_v1 }
 0x530   :  { %v1590_v52 = vpop.f32.mrb[2].mxu1 }
 0x531   :  { %v4136_v53 = vpop.f32.mrb[3].mxu1  ;;  %v5309_v54 = vadd.f32 %v5308_v51, %v1590_v52 }
 0x532   :  { %v1683_v53 = vld [vmem:[#allocation10 + $0x7d0] sm:$0xff] }
 0x533   :  { %v5950_v61 = vmax.f32 %v5309_v54, 0.0  ;;  %v1684_v54 = vld [vmem:[#allocation10 + $0x7d8] sm:$0xff] }
 0x534   :  { %v1595_v60 = vpop.f32.mrb[4].mxu1 }
 0x535   :  { %v5311_v56 = vadd.f32 %v5308_v51, %v1595_v60  ;;  %v4139_v58 = vpop.f32.mrb[5].mxu1  ;;  %v5066_v60 = vpack.c.bf16 %v1684_v54, %v1683_v53  ;;  %v3143_v54 = vld [vmem:[#allocation11 + $0x9] ss:$0 sm:$0xff] }
 0x536   :  { %v1686_v58 = vld [vmem:[#allocation10 + $0x7e8] sm:$0xff] }
 0x537   :  { %v5952_v62 = vmax.f32 %v5311_v56, 0.0  ;;  %v1685_v56 = vld [vmem:[#allocation10 + $0x7e0] sm:$0xff] }
 0x538   :  { %v1600_v63 = vpop.f32.mrb[6].mxu1 }
 0x539   :  { %v5313_v6 = vadd.f32 %v5308_v51, %v1600_v63  ;;  %v4142_v2 = vpop.f32.mrb[7].mxu1  ;;  %v5956_v5 = vpack.c.bf16 %v5952_v62, %v5950_v61  ;;  %v1682_v51 = vld [vmem:[#allocation10 + $0x7c8] sm:$0xff]  ;;  %v5070_v63 = vpack.c.bf16 %v1686_v58, %v1685_v56 }
 0x53a   :  { %v5062_v52 = vpack.c.bf16 %v1682_v51, %v1681_v50  ;;  %v1688_v2 = vld [vmem:[#allocation10 + $0x7f8] sm:$0xff]  ;;  %v2103_v51 = vld [vmem:[#allocation10 + $0x860] sm:$0xff] }
 0x53b   :  { %v5958_v11 = vmax.f32 %v5313_v6, 0.0  ;;  %4979 = vmatprep.subr.bf16.mxu0 %v5956_v5  ;;  %v1687_v6 = vld [vmem:[#allocation10 + $0x7f0] sm:$0xff] }
 0x53c   :  { %4981 = vmatpush3.bf16.msra.mxu0 %v5956_v5  ;;  %v5074_v8 = vpack.c.bf16 %v1688_v2, %v1687_v6  ;;  %v2108_v6 = vld [vmem:[#allocation10 + $0x880] sm:$0xff]  ;;  %v2109_v2 = vld [vmem:[#allocation10 + $0x888] sm:$0xff] }
 0x53d   :  { %4147 = vmatprep.subr.mxu0 %v5958_v11  ;;  %v5138_v10 = vpack.c.bf16 %v2109_v2, %v2108_v6  ;;  %v2152_v2 = vld [vmem:[#allocation10 + $0x9d0] sm:$0xff] }
 0x540   :  { %4148 = vmatpush3.msra.mxu0 %v5958_v11 }
 0x541   :  { %4150 = vmatmul.mubr.msk.f32.vlgmr.msra.gmra.mrb[42].mxu0 %vm202_vm0, %v5376_v57  ;;  %4983 = vmatprep.subr.bf16.mxu0 %v4982_v14  ;;  %v1660_v57 = vld [vmem:[#allocation10 + $0x720] sm:$0xff] }
 0x542   :  { %4985 = vmatpush3.bf16.msra.mxu0 %v4982_v14  ;;  %v1658_v14 = vld [vmem:[#allocation10 + $0x710] sm:$0xff] }
 0x543   :  { %4987 = vmatprep.subr.bf16.mxu0 %v4986_v15 }
 0x546   :  { %4989 = vmatpush3.bf16.msra.mxu0 %v4986_v15  ;;  %v1659_v15 = vld [vmem:[#allocation10 + $0x718] sm:$0xff] }
 0x547   :  { %4991 = vmatprep.subr.bf16.mxu0 %v4990_v59  ;;  %v5082_v55 = vpack.c.bf16 %v1659_v15, %v1658_v14  ;;  %v5377_v14 = vld [vmem:[%s6155_s3] sm:$0xff] }
 0x54a   :  { %4993 = vmatpush3.bf16.msra.mxu0 %v4990_v59  ;;  %v1661_v59 = vld [vmem:[#allocation10 + $0x728] sm:$0xff] }
 0x54b   :  { %4995 = vmatprep.subr.bf16.mxu0 %v4994_v19  ;;  %v5086_v17 = vpack.c.bf16 %v1661_v59, %v1660_v57  ;;  %v5379_v57 = vld [vmem:[%s6155_s3 + $0x10] sm:$0xff] }
 0x54e   :  { %4997 = vmatpush3.bf16.msra.mxu0 %v4994_v19  ;;  %v1663_v19 = vld [vmem:[#allocation10 + $0x738] sm:$0xff] }
 0x54f   :  { %4999 = vmatprep.subr.bf16.mxu0 %v4998_v21  ;;  %v5090_v20 = vpack.c.bf16 %v1663_v19, %v1662_v18  ;;  %v2117_v18 = vld [vmem:[#allocation10 + $0x8c8] sm:$0xff] }
 0x550   :  { %v5965_v7 = vpop.f32.mrb[8].mxu1 }
 0x551   :  { %v1923_v26 = vpop.f32.mrb[9].mxu1  ;;  %v1929_v16 = vadd.f32 %v5965_v7, %v3144_v9 }
 0x552   :  { %5001 = vmatpush3.bf16.msra.mxu0 %v4998_v21  ;;  %v1924_v42 = vadd.f32 %v3144_v9, %v1923_v26  ;;  %v1665_v21 = vld [vmem:[#allocation10 + $0x748] sm:$0xff]  ;;  %v5102_v26 = vpack.c.bf16 %v1669_v25, %v1668_v24  ;;  %v2095_v9 = vld [vmem:[#allocation10 + $0x820] sm:$0xff]  ;;  %v2123_v24 = vld [vmem:[#allocation10 + $0x8f8] sm:$0xff] }
 0x553   :  { %5003 = vmatprep.subr.bf16.mxu0 %v5002_v23  ;;  %v5094_v22 = vpack.c.bf16 %v1665_v21, %v1664_v3  ;;  %v2119_v3 = vld [vmem:[#allocation10 + $0x8d8] sm:$0xff] }
 0x556   :  { %5005 = vmatpush3.bf16.msra.mxu0 %v5002_v23  ;;  %v1667_v23 = vld [vmem:[#allocation10 + $0x758] sm:$0xff] }
 0x557   :  { %5007 = vmatprep.subr.bf16.mxu0 %v5006_v27  ;;  %v5098_v7 = vpack.c.bf16 %v1667_v23, %v1666_v4  ;;  %v2121_v4 = vld [vmem:[#allocation10 + $0x8e8] sm:$0xff] }
 0x55a   :  { %5009 = vmatpush3.bf16.msra.mxu0 %v5006_v27  ;;  %v1670_v27 = vld [vmem:[#allocation10 + $0x770] sm:$0xff] }
 0x55b   :  { %5011 = vmatprep.subr.bf16.mxu0 %v5010_v31  ;;  %v5106_v29 = vpack.c.bf16 %v1671_v28, %v1670_v27  ;;  %v5382_v27 = vld [vmem:[#allocation8 + $0x10] sm:$0xff]  ;;  %v2105_v28 = vld [vmem:[#allocation10 + $0x870] sm:$0xff] }
 0x55e   :  { %5013 = vmatpush3.bf16.msra.mxu0 %v5010_v31  ;;  %v2091_v31 = vld [vmem:[#allocation10 + $0x800] sm:$0xff] }
 0x55f   :  { %5047 = vmatprep.subr.bf16.mxu0 %v5046_v34 }
 0x614   :  { %v4151_v38 = vpop.f32.mrb[42].mxu0 }
 0x615   :  { %v1761_v39 = vpop.f32.mrb[43].mxu0 }
 0x616   :  { %4184 = vmatprep.mubr.f32.mxu0 %v1761_v39 }
 0x617   :  { %4185 = vmatmul.mubr.f32.vlgmr.msra.gmra.mrb[44].mxu0 %v4151_v38  ;;  %v2096_v38 = vld [vmem:[#allocation10 + $0x828] sm:$0xff] }
 0x618   :  { %5049 = vmatpush3.bf16.msra.mxu0 %v5046_v34  ;;  %4254 = vmatprep.mubr.f32.mxu0 %v1924_v42  ;;  %v5114_v34 = vpack.c.bf16 %v2092_v32, %v2091_v31  ;;  %v5120_v39 = vpack.c.bf16 %v2096_v38, %v2095_v9  ;;  %v2098_v42 = vld [vmem:[#allocation10 + $0x838] sm:$0xff]  ;;  %v3145_v32 = vld [vmem:[#allocation11 + $0xb] ss:$0 sm:$0xff] }
 0x619   :  { %5051 = vmatprep.subr.bf16.mxu0 %v5050_v40 }
 0x61a   :  { %5115 = vmatpush3.bf16.msra.mxu1 %v5114_v34  ;;  %v2143_v34 = vld [vmem:[#allocation10 + $0x988] sm:$0xff] }
 0x61b   :  { %5116 = vmatprep.subr.bf16.mxu1 %v5581_v0 }
 0x61c   :  { %5053 = vmatpush3.bf16.msra.mxu0 %v5050_v40  ;;  %v2097_v40 = vld [vmem:[#allocation10 + $0x830] sm:$0xff] }
 0x61d   :  { %5055 = vmatprep.subr.bf16.mxu0 %v5054_v44  ;;  %v5123_v41 = vpack.c.bf16 %v2098_v42, %v2097_v40  ;;  %v2144_v40 = vld [vmem:[#allocation10 + $0x990] sm:$0xff]  ;;  %v2145_v42 = vld [vmem:[#allocation10 + $0x998] sm:$0xff] }
 0x61e   :  { %5118 = vmatpush3.bf16.msra.mxu1 %v5117_v37 }
 0x61f   :  { %5119 = vmatprep.subr.bf16.mxu1 %v5581_v0 }
 0x620   :  { %5057 = vmatpush3.bf16.msra.mxu0 %v5054_v44  ;;  %v2100_v44 = vld [vmem:[#allocation10 + $0x848] sm:$0xff] }
 0x621   :  { %5059 = vmatprep.subr.bf16.mxu0 %v5058_v49  ;;  %v5126_v45 = vpack.c.bf16 %v2100_v44, %v2099_v43  ;;  %v5165_v44 = vpack.c.bf16 %v2145_v42, %v2144_v40  ;;  %v2140_v40 = vld [vmem:[#allocation10 + $0x978] sm:$0xff] }
 0x622   :  { %5121 = vmatpush3.bf16.msra.mxu1 %v5120_v39  ;;  %v5162_v39 = vpack.c.bf16 %v2143_v34, %v2142_v33  ;;  %v2135_v33 = vld [vmem:[#allocation10 + $0x950] sm:$0xff]  ;;  %v2136_v34 = vld [vmem:[#allocation10 + $0x958] sm:$0xff] }
 0x623   :  { %5122 = vmatprep.subr.bf16.mxu1 %v5581_v0 }
 0x624   :  { %5061 = vmatpush3.bf16.msra.mxu0 %v5058_v49  ;;  %v2102_v49 = vld [vmem:[#allocation10 + $0x858] sm:$0xff] }
 0x625   :  { %5063 = vmatprep.subr.bf16.mxu0 %v5062_v52  ;;  %v5129_v50 = vpack.c.bf16 %v2102_v49, %v2101_v46  ;;  %v2147_v46 = vld [vmem:[#allocation10 + $0x9a8] sm:$0xff] }
 0x626   :  { %5124 = vmatpush3.bf16.msra.mxu1 %v5123_v41 }
 0x627   :  { %5125 = vmatprep.subr.bf16.mxu1 %v5581_v0 }
 0x628   :  { %5065 = vmatpush3.bf16.msra.mxu0 %v5062_v52  ;;  %v2104_v52 = vld [vmem:[#allocation10 + $0x868] sm:$0xff] }
 0x629   :  { %5067 = vmatprep.subr.bf16.mxu0 %v5066_v60  ;;  %v5132_v53 = vpack.c.bf16 %v2104_v52, %v2103_v51  ;;  %v2148_v52 = vld [vmem:[#allocation10 + $0x9b0] sm:$0xff] }
 0x62a   :  { %5127 = vmatpush3.bf16.msra.mxu1 %v5126_v45  ;;  %v2146_v45 = vld [vmem:[#allocation10 + $0x9a0] sm:$0xff] }
 0x62b   :  { %5128 = vmatprep.subr.bf16.mxu1 %v5581_v0  ;;  %v5168_v51 = vpack.c.bf16 %v2147_v46, %v2146_v45  ;;  %v2588_v45 = vld [vmem:[#allocation10 + $0xa10] sm:$0xff]  ;;  %v2589_v46 = vld [vmem:[#allocation10 + $0xa18] sm:$0xff] }
 0x62c   :  { %5069 = vmatpush3.bf16.msra.mxu0 %v5066_v60 }
 0x62d   :  { %5071 = vmatprep.subr.bf16.mxu0 %v5070_v63 }
 0x62e   :  { %5130 = vmatpush3.bf16.msra.mxu1 %v5129_v50 }
 0x62f   :  { %5131 = vmatprep.subr.bf16.mxu1 %v5581_v0 }
 0x630   :  { %5073 = vmatpush3.bf16.msra.mxu0 %v5070_v63 }
 0x631   :  { %5075 = vmatprep.subr.bf16.mxu0 %v5074_v8 }
 0x632   :  { %5133 = vmatpush3.bf16.msra.mxu1 %v5132_v53  ;;  %v2149_v53 = vld [vmem:[#allocation10 + $0x9b8] sm:$0xff] }
 0x633   :  { %5134 = vmatprep.subr.bf16.mxu1 %v5581_v0 }
 0x634   :  { %5077 = vmatpush3.bf16.msra.mxu0 %v5074_v8  ;;  %v5111_v8 = vpack.c.bf16 %v1617_v48, %v1616_v35  ;;  %v2112_v35 = vld [vmem:[#allocation10 + $0x8a0] sm:$0xff]  ;;  %v5378_v48 = vld [vmem:[%s6155_s3 + $0x8] sm:$0xff]  ;;  %s5584_s3 = smov [#allocation14]  }
 0x635   :  { %5079 = vmatprep.subr.bf16.mxu0 %v5078_v13  ;;  %v5144_v15 = vpack.c.bf16 %v2113_v47, %v2112_v35  ;;  %v2157_v35 = vld [vmem:[#allocation10 + $0x9f8] sm:$0xff]  ;;  %s3105_s12 = sshll.u32 %s5584_s3, 4  ;;  %s3106_s12 = int_to_ptr.vmem [resolvable:$true] %s3105_s12 }
 0x636   :  { %s5515_s22 = scalar_lea.vmem %s3106_s12, 256  ;;  %p5520_p7 = scmp.lt.s32.totalorder %s3106_s12, %s3106_s12 }
 0x637   :  { %4255 = vmatmul.mubr.f32.vlgmr.msra.gmra.mrb[46].mxu0 %v1929_v16  ;;  %v2114_v16 = vld [vmem:[#allocation10 + $0x8b0] sm:$0xff]  ;;  %p5516_p6 = scmp.ne.s32.totalorder %s3106_s12, %s5515_s22  ;;  %p5521_p8 = scmp.lt.s32.totalorder %s5515_s22, %s5515_s22 }
 0x638   :  { %5081 = vmatpush3.bf16.msra.mxu0 %v5078_v13  ;;  %v2111_v13 = vld [vmem:[#allocation10 + $0x898] sm:$0xff] }
 0x639   :  { %5083 = vmatprep.subr.bf16.mxu0 %v5082_v55  ;;  %v5141_v30 = vpack.c.bf16 %v2111_v13, %v2110_v12  ;;  %v2154_v12 = vld [vmem:[#allocation10 + $0x9e0] sm:$0xff]  ;;  %v2155_v13 = vld [vmem:[#allocation10 + $0x9e8] sm:$0xff]  ;;  %p5522_p9 = por %p5521_p8, %p5520_p7 }
 0x63b   :  { %p5523_p10 = pnand %p5522_p9, %p5516_p6 }
 0x63c   :  { %5085 = vmatpush3.bf16.msra.mxu0 %v5082_v55  ;;  %v2115_v55 = vld [vmem:[#allocation10 + $0x8b8] sm:$0xff] }
 0x63d   :  { %5087 = vmatprep.subr.bf16.mxu0 %v5086_v17  ;;  %v5147_v59 = vpack.c.bf16 %v2115_v55, %v2114_v16  ;;  %v3150_v16 = vld [vmem:[#allocation11 + $0xd] ss:$0 sm:$0xff] }
 0x640   :  { %5089 = vmatpush3.bf16.msra.mxu0 %v5086_v17  ;;  %v2116_v17 = vld [vmem:[#allocation10 + $0x8c0] sm:$0xff] }
 0x641   :  { %5091 = vmatprep.subr.bf16.mxu0 %v5090_v20  ;;  %v5150_v19 = vpack.c.bf16 %v2117_v18, %v2116_v17  ;;  %v2127_v18 = vld [vmem:[#allocation10 + $0x910] sm:$0xff] }
 0x644   :  { %5093 = vmatpush3.bf16.msra.mxu0 %v5090_v20  ;;  %v2118_v20 = vld [vmem:[#allocation10 + $0x8d0] sm:$0xff] }
 0x645   :  { %5095 = vmatprep.subr.bf16.mxu0 %v5094_v22  ;;  %v5153_v21 = vpack.c.bf16 %v2119_v3, %v2118_v20 }
 0x648   :  { %5097 = vmatpush3.bf16.msra.mxu0 %v5094_v22  ;;  %v2120_v22 = vld [vmem:[#allocation10 + $0x8e0] sm:$0xff] }
 0x649   :  { %5099 = vmatprep.subr.bf16.mxu0 %v5098_v7  ;;  %v5156_v23 = vpack.c.bf16 %v2121_v4, %v2120_v22  ;;  %v2129_v4 = vld [vmem:[#allocation10 + $0x920] sm:$0xff] }
 0x64c   :  { %5101 = vmatpush3.bf16.msra.mxu0 %v5098_v7  ;;  %v2122_v7 = vld [vmem:[#allocation10 + $0x8f0] sm:$0xff] }
 0x64d   :  { %5103 = vmatprep.subr.bf16.mxu0 %v5102_v26  ;;  %v5159_v25 = vpack.c.bf16 %v2123_v24, %v2122_v7 }
 0x650   :  { %5105 = vmatpush3.bf16.msra.mxu0 %v5102_v26  ;;  %v5381_v26 = vld [vmem:[#allocation8 + $0x8] sm:$0xff] }
 0x651   :  { %5107 = vmatprep.subr.bf16.mxu0 %v5106_v29 }
 0x654   :  { %5109 = vmatpush3.bf16.msra.mxu0 %v5106_v29  ;;  %v2106_v29 = vld [vmem:[#allocation10 + $0x878] sm:$0xff] }
 0x655   :  { %5110 = vmatprep.subr.bf16.mxu0 %v5581_v0  ;;  %v5135_v31 = vpack.c.bf16 %v2106_v29, %v2105_v28  ;;  %v2133_v29 = vld [vmem:[#allocation10 + $0x940] sm:$0xff] }
 0x657   :  { %5136 = vmatpush3.bf16.msra.mxu1 %v5135_v31  ;;  %v2134_v31 = vld [vmem:[#allocation10 + $0x948] sm:$0xff] }
 0x658   :  { %5161 = vmatprep.subr.bf16.mxu1 %v5581_v0 }
 0x6ea   :  { %v4186_v60 = vpop.f32.mrb[44].mxu0 }
 0x6eb   :  { %v1842_v56 = vpop.f32.mrb[45].mxu0  ;;  %v1848_v63 = vadd.f32 %v4186_v60, %v3143_v54 }
 0x6ec   :  { %v1843_v58 = vadd.f32 %v3143_v54, %v1842_v56  ;;  %v5171_v56 = vpack.c.bf16 %v2149_v53, %v2148_v52  ;;  %v2592_v53 = vld [vmem:[#allocation10 + $0xa30] sm:$0xff] }
 0x6ee   :  { %4289 = vmatprep.mubr.f32.mxu0 %v1843_v58  ;;  %v2150_v58 = vld [vmem:[#allocation10 + $0x9c0] sm:$0xff] }
 0x6ef   :  { %4290 = vmatmul.mubr.f32.vlgmr.msra.gmra.mrb[46].mxu0 %v1848_v63  ;;  %v2151_v63 = vld [vmem:[#allocation10 + $0x9c8] sm:$0xff] }
 0x6f0   :  { %5112 = vmatpush3.bf16.msra.mxu0 %v5111_v8  ;;  %4296 = vmatprep.mubr.msk.f32.mxu0 %vm5582_vm1, %v5583_v1  ;;  %v5174_v6 = vpack.c.bf16 %v2151_v63, %v2150_v58  ;;  %v2153_v8 = vld [vmem:[#allocation10 + $0x9d8] sm:$0xff]  ;;  %v2595_v63 = vld [vmem:[#allocation10 + $0xa48] sm:$0xff] }
 0x6f1   :  { %5137 = vmatprep.subr.bf16.mxu0 %v5581_v0 }
 0x6f3   :  { %4297 = vmatmul.mubr.msk.f32.vlgmr.msra.gmra.mrb[48].mxu0 %vm678_vm2, %v5377_v14  ;;  %v5180_v14 = vpack.c.bf16 %v2155_v13, %v2154_v12  ;;  %v2596_v12 = vld [vmem:[#allocation10 + $0xa50] sm:$0xff]  ;;  %v2597_v13 = vld [vmem:[#allocation10 + $0xa58] sm:$0xff] }
 0x6f4   :  { %5139 = vmatpush3.bf16.msra.mxu0 %v5138_v10  ;;  %4299 = vmatprep.mubr.msk.f32.mxu0 %vm5582_vm1, %v5583_v1  ;;  %v5177_v10 = vpack.c.bf16 %v2153_v8, %v2152_v2 }
 0x6f5   :  { %5140 = vmatprep.subr.bf16.mxu0 %v5581_v0 }
 0x6f7   :  { %4300 = vmatmul.mubr.msk.f32.gmra.mrb[50].mxu0 %vm678_vm2, %v5378_v48  ;;  %v2125_v48 = vld [vmem:[#allocation10 + $0x900] sm:$0xff] }
 0x6f8   :  { %5142 = vmatpush3.bf16.msra.mxu0 %v5141_v30  ;;  %4302 = vmatprep.mubr.msk.f32.mxu0 %vm5582_vm1, %v5583_v1  ;;  %v2156_v30 = vld [vmem:[#allocation10 + $0x9f0] sm:$0xff] }
 0x6f9   :  { %5143 = vmatprep.subr.bf16.mxu0 %v5581_v0  ;;  %v5183_v47 = vpack.c.bf16 %v2157_v35, %v2156_v30  ;;  %v5228_v35 = vpack.c.bf16 %v2597_v13, %v2596_v12  ;;  %v2648_v12 = vld [vmem:[#allocation10 + $0xbd8] sm:$0xff] }
 0x6fb   :  { %4303 = vmatmul.mubr.msk.f32.gmra.mrb[52].mxu0 %vm678_vm2, %v5379_v57 }
 0x6fc   :  { %5145 = vmatpush3.bf16.msra.mxu0 %v5144_v15  ;;  %4378 = vmatprep.mubr.msk.f32.mxu0 %vm5582_vm1, %v5583_v1  ;;  %v2126_v15 = vld [vmem:[#allocation10 + $0x908] sm:$0xff] }
 0x6fd   :  { %5146 = vmatprep.subr.bf16.mxu0 %v5581_v0  ;;  %v5186_v57 = vpack.c.bf16 %v2126_v15, %v2125_v48  ;;  %v2599_v48 = vld [vmem:[#allocation10 + $0xa68] sm:$0xff] }
 0x700   :  { %5148 = vmatpush3.bf16.msra.mxu0 %v5147_v59 }
 0x701   :  { %5149 = vmatprep.subr.bf16.mxu0 %v5581_v0 }
 0x704   :  { %5151 = vmatpush3.bf16.msra.mxu0 %v5150_v19  ;;  %v2128_v19 = vld [vmem:[#allocation10 + $0x918] sm:$0xff] }
 0x705   :  { %5152 = vmatprep.subr.bf16.mxu0 %v5581_v0  ;;  %v5189_v3 = vpack.c.bf16 %v2128_v19, %v2127_v18  ;;  %v3149_v18 = vld [vmem:[#allocation11 + $0xc] ss:$0 sm:$0xff] }
 0x708   :  { %5154 = vmatpush3.bf16.msra.mxu0 %v5153_v21 }
 0x709   :  { %5155 = vmatprep.subr.bf16.mxu0 %v5581_v0 }
 0x70c   :  { %5157 = vmatpush3.bf16.msra.mxu0 %v5156_v23  ;;  %v2130_v23 = vld [vmem:[#allocation10 + $0x928] sm:$0xff] }
 0x70d   :  { %5158 = vmatprep.subr.bf16.mxu0 %v5581_v0  ;;  %v5192_v24 = vpack.c.bf16 %v2130_v23, %v2129_v4  ;;  %v2606_v4 = vld [vmem:[#allocation10 + $0xa98] sm:$0xff] }
 0x710   :  { %5160 = vmatpush3.bf16.msra.mxu0 %v5159_v25 }
 0x711   :  { %5209 = vmatprep.subr.bf16.mxu0 %v5581_v0 }
 0x713   :  { %4379 = vmatmul.mubr.f32.vlgmr.msra.gmra.mrb[54].mxu0 %v5950_v61 }
 0x714   :  { %5211 = vmatpush3.bf16.msra.mxu0 %v5956_v5  ;;  %4381 = vmatprep.mubr.msk.f32.mxu0 %vm5582_vm1, %v5583_v1  ;;  %v5380_v5 = vld [vmem:[#allocation8] sm:$0xff] }
 0x715   :  { %4473 = vmatprep.subr.mxu0 %v5583_v1 }
 0x717   :  { %4382 = vmatmul.mubr.f32.gmra.mrb[56].mxu0 %v5952_v62 }
 0x718   :  { %4474 = vmatpush3.msra.mxu0 %v5958_v11  ;;  %4384 = vmatprep.mubr.msk.f32.mxu0 %vm5582_vm1, %v5583_v1 }
 0x719   :  { %5212 = vmatprep.subr.bf16.mxu0 %v5581_v0 }
 0x71b   :  { %4385 = vmatmul.mubr.f32.gmra.mrb[58].mxu0 %v5958_v11 }
 0x71c   :  { %4475 = vmatprep.mubr.msk.f32.mxu0 %vm5582_vm1, %v5583_v1 }
 0x71f   :  { %4476 = vmatmul.mubr.msk.f32.vlgmr.msra.gmra.mrb[60].mxu0 %vm202_vm0, %v5380_v5 }
 0x720   :  { %4478 = vmatprep.mubr.msk.f32.mxu0 %vm5582_vm1, %v5583_v1 }
 0x723   :  { %4479 = vmatmul.mubr.msk.f32.gmra.mrb[62].mxu0 %vm202_vm0, %v5381_v26  ;;  %v2131_v26 = vld [vmem:[#allocation10 + $0x930] sm:$0xff] }
 0x724   :  { %4481 = vmatprep.mubr.msk.f32.mxu0 %vm5582_vm1, %v5583_v1 }
 0x727   :  { %4482 = vmatmul.mubr.msk.f32.gmra.mrb[64].mxu0 %vm202_vm0, %v5382_v27  ;;  %v2132_v27 = vld [vmem:[#allocation10 + $0x938] sm:$0xff] }
 0x728   :  { %4516 = vmatprep.mubr.msk.f32.mxu0 %vm5582_vm1, %v5583_v1  ;;  %v5195_v28 = vpack.c.bf16 %v2132_v27, %v2131_v26 }
 0x7c2   :  { %v4291_v36 = vpop.f32.mrb[46].mxu0 }
 0x7c3   :  { %v2089_v37 = vadd.f32 %v4291_v36, %v3145_v32  ;;  %v2073_v9 = vpop.f32.mrb[47].mxu0  ;;  %v5201_v36 = vpack.c.bf16 %v2136_v34, %v2135_v33 }
 0x7c4   :  { %v2088_v38 = vadd.f32 %v3145_v32, %v2073_v9  ;;  %v5198_v32 = vpack.c.bf16 %v2134_v31, %v2133_v29  ;;  %v2138_v9 = vld [vmem:[#allocation10 + $0x968] sm:$0xff]  ;;  %v2609_v29 = vld [vmem:[#allocation10 + $0xab0] sm:$0xff]  ;;  %v2610_v31 = vld [vmem:[#allocation10 + $0xab8] sm:$0xff] }
 0x7c5   :  { %3087 = vst [vmem:[#allocation14 + $0x8] sm:$0xff] %v2089_v37  ;;  %v2137_v37 = vld [vmem:[#allocation10 + $0x960] sm:$0xff]  ;;  %v5246_v34 = vpack.c.bf16 %v2610_v31, %v2609_v29 }
 0x7c6   :  { %3086 = vst [vmem:[#allocation14] sm:$0xff] %v2088_v38  ;;  %v2230_v41 = vpop.f32.mrb[48].mxu0  ;;  %v5204_v38 = vpack.c.bf16 %v2138_v9, %v2137_v37  ;;  %v2612_v37 = vld [vmem:[#allocation10 + $0xac8] sm:$0xff] }
 0x7c7   :  { %4338 = vmatmul.mubr.f32.vlgmr.msra.gmra.mrb[10].mxu1 %v2230_v41  ;;  %v4298_v43 = vpop.f32.mrb[49].mxu0  ;;  %v2586_v41 = vld [vmem:[#allocation10 + $0xa00] sm:$0xff] }
 0x7c8   :  { %5163 = vmatpush3.bf16.msra.mxu1 %v5162_v39  ;;  %4340 = vmatprep.mubr.msk.f32.mxu1 %vm5582_vm1, %v5583_v1  ;;  %v2139_v39 = vld [vmem:[#allocation10 + $0x970] sm:$0xff]  ;;  %v2587_v43 = vld [vmem:[#allocation10 + $0xa08] sm:$0xff] }
 0x7c9   :  { %5164 = vmatprep.subr.bf16.mxu1 %v5581_v0  ;;  %v5207_v42 = vpack.c.bf16 %v2140_v40, %v2139_v39  ;;  %v2614_v39 = vld [vmem:[#allocation10 + $0xad8] sm:$0xff] }
 0x7ca   :  { %v2235_v49 = vpop.f32.mrb[50].mxu0 }
 0x7cb   :  { %4341 = vmatmul.mubr.f32.gmra.mrb[12].mxu1 %v2235_v49  ;;  %v4301_v50 = vpop.f32.mrb[51].mxu0  ;;  %v5216_v49 = vpack.c.bf16 %v2589_v46, %v2588_v45  ;;  %v2618_v45 = vld [vmem:[#allocation10 + $0xaf8] sm:$0xff] }
 0x7cc   :  { %5166 = vmatpush3.bf16.msra.mxu1 %v5165_v44  ;;  %4343 = vmatprep.mubr.msk.f32.mxu1 %vm5582_vm1, %v5583_v1  ;;  %v5213_v44 = vpack.c.bf16 %v2587_v43, %v2586_v41  ;;  %v2590_v50 = vld [vmem:[#allocation10 + $0xa20] sm:$0xff]  ;;  %v2616_v41 = vld [vmem:[#allocation10 + $0xae8] sm:$0xff] }
 0x7cd   :  { %5167 = vmatprep.subr.bf16.mxu1 %v5581_v0 }
 0x7ce   :  { %v2240_v54 = vpop.f32.mrb[52].mxu0  ;;  %5214 = vmatpush3.bf16.msra.mxu0 %v5213_v44  ;;  %v2617_v44 = vld [vmem:[#allocation10 + $0xaf0] sm:$0xff] }
 0x7cf   :  { %4344 = vmatmul.mubr.f32.gmra.mrb[14].mxu1 %v2240_v54  ;;  %v4304_v60 = vpop.f32.mrb[53].mxu0  ;;  %5215 = vmatprep.subr.bf16.mxu0 %v5581_v0  ;;  %v2593_v54 = vld [vmem:[#allocation10 + $0xa38] sm:$0xff]  ;;  %v5258_v46 = vpack.c.bf16 %v2618_v45, %v2617_v44  ;;  %v2633_v44 = vld [vmem:[#allocation10 + $0xb68] sm:$0xff] }
 0x7d0   :  { %5169 = vmatpush3.bf16.msra.mxu1 %v5168_v51  ;;  %4419 = vmatprep.mubr.msk.f32.mxu1 %vm5582_vm1, %v5583_v1  ;;  %v2591_v51 = vld [vmem:[#allocation10 + $0xa28] sm:$0xff]  ;;  %v2594_v60 = vld [vmem:[#allocation10 + $0xa40] sm:$0xff]  ;;  %v5222_v58 = vpack.c.bf16 %v2593_v54, %v2592_v53  ;;  %v2640_v53 = vld [vmem:[#allocation10 + $0xb98] sm:$0xff] }
 0x7d1   :  { %5170 = vmatprep.subr.bf16.mxu1 %v5581_v0  ;;  %v5219_v52 = vpack.c.bf16 %v2591_v51, %v2590_v50  ;;  %v5225_v8 = vpack.c.bf16 %v2595_v63, %v2594_v60  ;;  %v2638_v50 = vld [vmem:[#allocation10 + $0xb88] sm:$0xff]  ;;  %v2641_v60 = vld [vmem:[#allocation10 + $0xba0] sm:$0xff]  ;;  %v2643_v63 = vld [vmem:[#allocation10 + $0xbb0] sm:$0xff] }
 0x7d2   :  { %5217 = vmatpush3.bf16.msra.mxu0 %v5216_v49  ;;  %v2637_v49 = vld [vmem:[#allocation10 + $0xb80] sm:$0xff] }
 0x7d3   :  { %5218 = vmatprep.subr.bf16.mxu0 %v5581_v0  ;;  %v5261_v51 = vpack.c.bf16 %v2638_v50, %v2637_v49  ;;  %v2635_v49 = vld [vmem:[#allocation10 + $0xb78] sm:$0xff]  ;;  %v3155_v50 = vld [vmem:[#allocation11 + $0xf] ss:$0 sm:$0xff] }
 0x7d4   :  { %5172 = vmatpush3.bf16.msra.mxu1 %v5171_v56 }
 0x7d5   :  { %5173 = vmatprep.subr.bf16.mxu1 %v5581_v0 }
 0x7d6   :  { %5220 = vmatpush3.bf16.msra.mxu0 %v5219_v52  ;;  %v2639_v52 = vld [vmem:[#allocation10 + $0xb90] sm:$0xff] }
 0x7d7   :  { %5221 = vmatprep.subr.bf16.mxu0 %v5581_v0  ;;  %v5264_v54 = vpack.c.bf16 %v2640_v53, %v2639_v52 }
 0x7d8   :  { %5175 = vmatpush3.bf16.msra.mxu1 %v5174_v6 }
 0x7d9   :  { %5176 = vmatprep.subr.bf16.mxu1 %v5581_v0 }
 0x7da   :  { %5223 = vmatpush3.bf16.msra.mxu0 %v5222_v58 }
 0x7db   :  { %5224 = vmatprep.subr.bf16.mxu0 %v5581_v0 }
 0x7dc   :  { %5178 = vmatpush3.bf16.msra.mxu1 %v5177_v10 }
 0x7dd   :  { %5179 = vmatprep.subr.bf16.mxu1 %v5581_v0 }
 0x7de   :  { %5226 = vmatpush3.bf16.msra.mxu0 %v5225_v8 }
 0x7df   :  { %5227 = vmatprep.subr.bf16.mxu0 %v5581_v0 }
 0x7e0   :  { %5181 = vmatpush3.bf16.msra.mxu1 %v5180_v14 }
 0x7e1   :  { %5182 = vmatprep.subr.bf16.mxu1 %v5581_v0 }
 0x7e2   :  { %5229 = vmatpush3.bf16.msra.mxu0 %v5228_v35  ;;  %v2651_v35 = vld [vmem:[#allocation10 + $0xbf0] sm:$0xff] }
 0x7e3   :  { %5230 = vmatprep.subr.bf16.mxu0 %v5581_v0 }
 0x7e4   :  { %5184 = vmatpush3.bf16.msra.mxu1 %v5183_v47  ;;  %v2598_v47 = vld [vmem:[#allocation10 + $0xa60] sm:$0xff] }
 0x7e5   :  { %5185 = vmatprep.subr.bf16.mxu1 %v5581_v0  ;;  %v5231_v15 = vpack.c.bf16 %v2599_v48, %v2598_v47  ;;  %v2652_v47 = vld [vmem:[#allocation10 + $0xbf8] sm:$0xff] }
 0x7e6   :  { %v2402_v55 = vpop.f32.mrb[54].mxu0  ;;  %v5282_v48 = vpack.c.bf16 %v2652_v47, %v2651_v35 }
 0x7e7   :  { %v2403_v59 = vadd.f32 %v3150_v16, %v2402_v55  ;;  %v4380_v17 = vpop.f32.mrb[55].mxu0  ;;  %v2601_v55 = vld [vmem:[#allocation10 + $0xa78] sm:$0xff]  ;;  %5232 = vmatpush3.bf16.msra.mxu0 %v5231_v15 }
 0x7e8   :  { %5233 = vmatprep.subr.bf16.mxu0 %v5581_v0  ;;  %v2604_v17 = vld [vmem:[#allocation10 + $0xa88] sm:$0xff] }
 0x7e9   :  { %4420 = vmatmul.mubr.f32.vlgmr.msra.gmra.mrb[16].mxu1 %v2403_v59  ;;  %v2603_v59 = vld [vmem:[#allocation10 + $0xa80] sm:$0xff] }
 0x7ea   :  { %v2407_v20 = vpop.f32.mrb[56].mxu0  ;;  %4422 = vmatprep.mubr.msk.f32.mxu1 %vm5582_vm1, %v5583_v1  ;;  %5187 = vmatpush3.bf16.msra.mxu1 %v5186_v57 }
 0x7eb   :  { %v2408_v21 = vadd.f32 %v3150_v16, %v2407_v20  ;;  %v4383_v22 = vpop.f32.mrb[57].mxu0  ;;  %5188 = vmatprep.subr.bf16.mxu1 %v5581_v0  ;;  %v5237_v20 = vpack.c.bf16 %v2604_v17, %v2603_v59 }
 0x7ec   :  { %v2605_v22 = vld [vmem:[#allocation10 + $0xa90] sm:$0xff] }
 0x7ed   :  { %4423 = vmatmul.mubr.f32.gmra.mrb[18].mxu1 %v2408_v21  ;;  %v5240_v23 = vpack.c.bf16 %v2606_v4, %v2605_v22 }
 0x7ee   :  { %v2412_v7 = vpop.f32.mrb[58].mxu0  ;;  %4425 = vmatprep.mubr.msk.f32.mxu1 %vm5582_vm1, %v5583_v1  ;;  %5190 = vmatpush3.bf16.msra.mxu1 %v5189_v3 }
 0x7ef   :  { %v2413_v25 = vadd.f32 %v3150_v16, %v2412_v7  ;;  %v4386_v5 = vpop.f32.mrb[59].mxu0  ;;  %5191 = vmatprep.subr.bf16.mxu1 %v5581_v0  ;;  %v2600_v16 = vld [vmem:[#allocation10 + $0xa70] sm:$0xff] }
 0x7f0   :  { %v5234_v57 = vpack.c.bf16 %v2601_v55, %v2600_v16 }
 0x7f1   :  { %4426 = vmatmul.mubr.f32.gmra.mrb[20].mxu1 %v2413_v25  ;;  %v2608_v25 = vld [vmem:[#allocation10 + $0xaa8] sm:$0xff] }
 0x7f2   :  { %5193 = vmatpush3.bf16.msra.mxu1 %v5192_v24  ;;  %4460 = vmatprep.mubr.msk.f32.mxu1 %vm5582_vm1, %v5583_v1  ;;  %v2725_v56 = vpop.f32.mrb[60].mxu0  ;;  %v2607_v24 = vld [vmem:[#allocation10 + $0xaa0] sm:$0xff] }
 0x7f3   :  { %5194 = vmatprep.subr.bf16.mxu1 %v5581_v0  ;;  %v4477_v6 = vpop.f32.mrb[61].mxu0  ;;  %5235 = vmatpush3.bf16.msra.mxu0 %v5234_v57  ;;  %v5243_v27 = vpack.c.bf16 %v2608_v25, %v2607_v24 }
 0x7f6   :  { %5196 = vmatpush3.bf16.msra.mxu1 %v5195_v28  ;;  %v2730_v2 = vpop.f32.mrb[62].mxu0  ;;  %4517 = vmatmul.mubr.f32.vlgmr.msra.gmra.mrb[66].mxu0 %v2725_v56  ;;  %v2642_v56 = vld [vmem:[#allocation10 + $0xba8] sm:$0xff] }
 0x7f7   :  { %5197 = vmatprep.subr.bf16.mxu1 %v5581_v0  ;;  %v4480_v10 = vpop.f32.mrb[63].mxu0  ;;  %4519 = vmatprep.mubr.msk.f32.mxu0 %vm5582_vm1, %v5583_v1  ;;  %v5267_v58 = vpack.c.bf16 %v2642_v56, %v2641_v60 }
 0x7f8   :  { %v2647_v10 = vld [vmem:[#allocation10 + $0xbd0] sm:$0xff] }
 0x7f9   :  { %v5276_v13 = vpack.c.bf16 %v2648_v12, %v2647_v10 }
 0x7fa   :  { %5199 = vmatpush3.bf16.msra.mxu1 %v5198_v32  ;;  %v2735_v14 = vpop.f32.mrb[64].mxu0  ;;  %4520 = vmatmul.mubr.f32.gmra.mrb[68].mxu0 %v2730_v2  ;;  %v2645_v2 = vld [vmem:[#allocation10 + $0xbc0] sm:$0xff] }
 0x7fb   :  { %5200 = vmatprep.subr.bf16.mxu1 %v5581_v0  ;;  %v4483_v30 = vpop.f32.mrb[65].mxu0  ;;  %4522 = vmatprep.mubr.msk.f32.mxu0 %vm5582_vm1, %v5583_v1 }
 0x7fe   :  { %5202 = vmatpush3.bf16.msra.mxu1 %v5201_v36  ;;  %4523 = vmatmul.mubr.f32.gmra.mrb[70].mxu0 %v2735_v14  ;;  %v2611_v36 = vld [vmem:[#allocation10 + $0xac0] sm:$0xff]  ;;  %v2650_v14 = vld [vmem:[#allocation10 + $0xbe8] sm:$0xff] }
 0x7ff   :  { %5203 = vmatprep.subr.bf16.mxu1 %v5581_v0  ;;  %v5249_v9 = vpack.c.bf16 %v2612_v37, %v2611_v36  ;;  %v2627_v36 = vld [vmem:[#allocation10 + $0xb38] sm:$0xff] }
 0x802   :  { %5205 = vmatpush3.bf16.msra.mxu1 %v5204_v38  ;;  %v2613_v38 = vld [vmem:[#allocation10 + $0xad0] sm:$0xff] }
 0x803   :  { %5206 = vmatprep.subr.bf16.mxu1 %v5581_v0  ;;  %v5252_v40 = vpack.c.bf16 %v2614_v39, %v2613_v38  ;;  %v2629_v38 = vld [vmem:[#allocation10 + $0xb48] sm:$0xff] }
 0x806   :  { %5208 = vmatpush3.bf16.msra.mxu1 %v5207_v42  ;;  %v2615_v42 = vld [vmem:[#allocation10 + $0xae0] sm:$0xff] }
 0x807   :  { %5236 = vmatprep.subr.bf16.mxu1 %v5581_v0  ;;  %v5255_v43 = vpack.c.bf16 %v2616_v41, %v2615_v42  ;;  %v2631_v42 = vld [vmem:[#allocation10 + $0xb58] sm:$0xff] }
 0x89a   :  { %v2316_v19 = vpop.f32.mrb[10].mxu1 }
 0x89b   :  { %v2317_v3 = vadd.f32 %v3149_v18, %v2316_v19  ;;  %v4339_v21 = vpop.f32.mrb[11].mxu1  ;;  %v2621_v19 = vld [vmem:[#allocation10 + $0xb08] sm:$0xff] }
 0x89d   :  { %4461 = vmatmul.mubr.f32.vlgmr.msra.gmra.mrb[16].mxu1 %v2317_v3 }
 0x89e   :  { %5238 = vmatpush3.bf16.msra.mxu1 %v5237_v20  ;;  %v2321_v7 = vpop.f32.mrb[12].mxu1  ;;  %4463 = vmatprep.mubr.msk.f32.mxu1 %vm5582_vm1, %v5583_v1  ;;  %v3156_v20 = vld [vmem:[#allocation11 + $0x10] ss:$0 sm:$0xff] }
 0x89f   :  { %5239 = vmatprep.subr.bf16.mxu1 %v5581_v0  ;;  %v2322_v5 = vadd.f32 %v3149_v18, %v2321_v7  ;;  %v4342_v26 = vpop.f32.mrb[13].mxu1  ;;  %v2623_v7 = vld [vmem:[#allocation10 + $0xb18] sm:$0xff] }
 0x8a1   :  { %4464 = vmatmul.mubr.f32.gmra.mrb[18].mxu1 %v2322_v5 }
 0x8a2   :  { %5241 = vmatpush3.bf16.msra.mxu1 %v5240_v23  ;;  %v2326_v28 = vpop.f32.mrb[14].mxu1  ;;  %4466 = vmatprep.mubr.msk.f32.mxu1 %vm5582_vm1, %v5583_v1  ;;  %v2622_v23 = vld [vmem:[#allocation10 + $0xb10] sm:$0xff] }
 0x8a3   :  { %5242 = vmatprep.subr.bf16.mxu1 %v5581_v0  ;;  %v2327_v32 = vadd.f32 %v3149_v18, %v2326_v28  ;;  %v4345_v33 = vpop.f32.mrb[15].mxu1  ;;  %v2620_v18 = vld [vmem:[#allocation10 + $0xb00] sm:$0xff]  ;;  %v5288_v25 = vpack.c.bf16 %v2623_v7, %v2622_v23  ;;  %v2625_v28 = vld [vmem:[#allocation10 + $0xb28] sm:$0xff] }
 0x8a4   :  { %v5285_v21 = vpack.c.bf16 %v2621_v19, %v2620_v18 }
 0x8a5   :  { %4467 = vmatmul.mubr.f32.gmra.mrb[20].mxu1 %v2327_v32 }
 0x8a6   :  { %5244 = vmatpush3.bf16.msra.mxu1 %v5243_v27  ;;  %4557 = vmatprep.mubr.msk.f32.mxu1 %vm5582_vm1, %v5583_v1  ;;  %v2624_v27 = vld [vmem:[#allocation10 + $0xb20] sm:$0xff] }
 0x8a7   :  { %5245 = vmatprep.subr.bf16.mxu1 %v5581_v0  ;;  %v5291_v31 = vpack.c.bf16 %v2625_v28, %v2624_v27 }
 0x8aa   :  { %5247 = vmatpush3.bf16.msra.mxu1 %v5246_v34  ;;  %v2626_v34 = vld [vmem:[#allocation10 + $0xb30] sm:$0xff] }
 0x8ab   :  { %5248 = vmatprep.subr.bf16.mxu1 %v5581_v0  ;;  %v5294_v37 = vpack.c.bf16 %v2627_v36, %v2626_v34 }
 0x8ae   :  { %5250 = vmatpush3.bf16.msra.mxu1 %v5249_v9  ;;  %v2628_v9 = vld [vmem:[#allocation10 + $0xb40] sm:$0xff] }
 0x8af   :  { %5251 = vmatprep.subr.bf16.mxu1 %v5581_v0  ;;  %v5297_v39 = vpack.c.bf16 %v2629_v38, %v2628_v9 }
 0x8b2   :  { %5253 = vmatpush3.bf16.msra.mxu1 %v5252_v40  ;;  %v2630_v40 = vld [vmem:[#allocation10 + $0xb50] sm:$0xff] }
 0x8b3   :  { %5254 = vmatprep.subr.bf16.mxu1 %v5581_v0  ;;  %v5300_v41 = vpack.c.bf16 %v2631_v42, %v2630_v40 }
 0x8b6   :  { %5256 = vmatpush3.bf16.msra.mxu1 %v5255_v43  ;;  %v2632_v43 = vld [vmem:[#allocation10 + $0xb60] sm:$0xff] }
 0x8b7   :  { %5257 = vmatprep.subr.bf16.mxu1 %v5581_v0  ;;  %v5303_v45 = vpack.c.bf16 %v2633_v44, %v2632_v43 }
 0x8ba   :  { %5259 = vmatpush3.bf16.msra.mxu1 %v5258_v46  ;;  %v2634_v46 = vld [vmem:[#allocation10 + $0xb70] sm:$0xff] }
 0x8bb   :  { %5260 = vmatprep.subr.bf16.mxu1 %v5581_v0 }
 0x8bd   :  { %4558 = vmatmul.mubr.f32.vlgmr.msra.gmra.mrb[22].mxu1 %v5950_v61  ;;  %v2644_v61 = vld [vmem:[#allocation10 + $0xbb8] sm:$0xff] }
 0x8be   :  { %4560 = vmatprep.mubr.msk.f32.mxu1 %vm5582_vm1, %v5583_v1  ;;  %5262 = vmatpush3.bf16.msra.mxu1 %v5261_v51  ;;  %v5270_v6 = vpack.c.bf16 %v2644_v61, %v2643_v63  ;;  %v5306_v51 = vpack.c.bf16 %v2635_v49, %v2634_v46 }
 0x8bf   :  { %5263 = vmatprep.subr.bf16.mxu1 %v5581_v0 }
 0x8c1   :  { %4561 = vmatmul.mubr.f32.gmra.mrb[24].mxu1 %v5952_v62  ;;  %v2646_v62 = vld [vmem:[#allocation10 + $0xbc8] sm:$0xff] }
 0x8c2   :  { %4563 = vmatprep.mubr.msk.f32.mxu1 %vm5582_vm1, %v5583_v1  ;;  %5265 = vmatpush3.bf16.msra.mxu1 %v5264_v54  ;;  %v5273_v8 = vpack.c.bf16 %v2646_v62, %v2645_v2 }
 0x8c3   :  { %5266 = vmatprep.subr.bf16.mxu1 %v5581_v0 }
 0x8c5   :  { %4564 = vmatmul.mubr.f32.gmra.mrb[26].mxu1 %v5958_v11  ;;  %v2649_v11 = vld [vmem:[#allocation10 + $0xbe0] sm:$0xff] }
 0x8c6   :  { %5268 = vmatpush3.bf16.msra.mxu1 %v5267_v58  ;;  %4598 = vmatprep.mubr.msk.f32.mxu1 %vm5582_vm1, %v5583_v1  ;;  %v5279_v30 = vpack.c.bf16 %v2650_v14, %v2649_v11 }
 0x8c7   :  { %5269 = vmatprep.subr.bf16.mxu1 %v5581_v0 }
 0x8c9   :  { %v2811_v15 = vpop.f32.mrb[66].mxu0 }
 0x8ca   :  { %5271 = vmatpush3.bf16.msra.mxu1 %v5270_v6  ;;  %v4518_v16 = vpop.f32.mrb[67].mxu0  ;;  %v2812_v52 = vadd.f32 %v3155_v50, %v2811_v15 }
 0x8cb   :  { %5272 = vmatprep.subr.bf16.mxu1 %v5581_v0 }
 0x8cd   :  { %v2816_v55 = vpop.f32.mrb[68].mxu0 }
 0x8ce   :  { %5274 = vmatpush3.bf16.msra.mxu1 %v5273_v8  ;;  %v4521_v57 = vpop.f32.mrb[69].mxu0  ;;  %v2817_v53 = vadd.f32 %v3155_v50, %v2816_v55 }
 0x8cf   :  { %5275 = vmatprep.subr.bf16.mxu1 %v5581_v0 }
 0x8d1   :  { %v6102_v59 = vpop.f32.mrb[70].mxu0 }
 0x8d2   :  { %5277 = vmatpush3.bf16.msra.mxu1 %v5276_v13  ;;  %v4524_v17 = vpop.f32.mrb[71].mxu0  ;;  %v2822_v54 = vadd.f32 %v3155_v50, %v6102_v59 }
 0x8d3   :  { %5278 = vmatprep.subr.bf16.mxu1 %v5581_v0 }
 0x8d6   :  { %5280 = vmatpush3.bf16.msra.mxu1 %v5279_v30 }
 0x8d7   :  { %5281 = vmatprep.subr.bf16.mxu1 %v5581_v0 }
 0x8da   :  { %5283 = vmatpush3.bf16.msra.mxu1 %v5282_v48 }
 0x8db   :  { %5284 = vmatprep.subr.bf16.mxu1 %v5581_v0 }
 0x990   :  { %v2897_v3 = vpop.f32.mrb[22].mxu1 }
 0x991   :  { %v2898_v22 = vadd.f32 %v3156_v20, %v2897_v3  ;;  %v4559_v4 = vpop.f32.mrb[23].mxu1 }
 0x993   :  { %4599 = vmatmul.mubr.f32.vlgmr.msra.gmra.mrb[16].mxu1 %v2898_v22 }
 0x994   :  { %5286 = vmatpush3.bf16.msra.mxu1 %v5285_v21  ;;  %v2902_v24 = vpop.f32.mrb[24].mxu1  ;;  %4601 = vmatprep.mubr.msk.f32.mxu1 %vm5582_vm1, %v5583_v1 }
 0x995   :  { %v2903_v5 = vadd.f32 %v3156_v20, %v2902_v24  ;;  %v4562_v26 = vpop.f32.mrb[25].mxu1  ;;  %5287 = vmatprep.subr.bf16.mxu1 %v5581_v0 }
 0x997   :  { %4602 = vmatmul.mubr.f32.gmra.mrb[18].mxu1 %v2903_v5 }
 0x998   :  { %5289 = vmatpush3.bf16.msra.mxu1 %v5288_v25  ;;  %v2907_v29 = vpop.f32.mrb[26].mxu1  ;;  %4604 = vmatprep.mubr.msk.f32.mxu1 %vm5582_vm1, %v5583_v1 }
 0x999   :  { %v2908_v32 = vadd.f32 %v3156_v20, %v2907_v29  ;;  %v4565_v33 = vpop.f32.mrb[27].mxu1  ;;  %5290 = vmatprep.subr.bf16.mxu1 %v5581_v0 }
 0x99b   :  { %4605 = vmatmul.mubr.f32.gmra.mrb[20].mxu1 %v2908_v32 }
 0x99c   :  { %5292 = vmatpush3.bf16.msra.mxu1 %v5291_v31  ;;  %4639 = vmatprep.mubr.msk.f32.mxu1 %vm5582_vm1, %v5583_v1 }
 0x99d   :  { %5293 = vmatprep.subr.bf16.mxu1 %v5581_v0 }
 0x9a0   :  { %5295 = vmatpush3.bf16.msra.mxu1 %v5294_v37 }
 0x9a1   :  { %5296 = vmatprep.subr.bf16.mxu1 %v5581_v0 }
 0x9a4   :  { %5298 = vmatpush3.bf16.msra.mxu1 %v5297_v39 }
 0x9a5   :  { %5299 = vmatprep.subr.bf16.mxu1 %v5581_v0 }
 0x9a8   :  { %5301 = vmatpush3.bf16.msra.mxu1 %v5300_v41 }
 0x9a9   :  { %5302 = vmatprep.subr.bf16.mxu1 %v5581_v0 }
 0x9ac   :  { %5304 = vmatpush3.bf16.msra.mxu1 %v5303_v45 }
 0x9ad   :  { %5305 = vmatprep.subr.bf16.mxu1 %v5581_v0 }
 0x9b0   :  { %5307 = vmatpush3.bf16.msra.mxu1 %v5306_v51 }
 0x9b3   :  { %4640 = vmatmul.mubr.f32.vlgmr.msra.gmra.mrb[16].mxu1 %v2812_v52 }
 0x9b4   :  { %4642 = vmatprep.mubr.msk.f32.mxu1 %vm5582_vm1, %v5583_v1 }
 0x9b7   :  { %4643 = vmatmul.mubr.f32.gmra.mrb[18].mxu1 %v2817_v53 }
 0x9b8   :  { %4645 = vmatprep.mubr.msk.f32.mxu1 %vm5582_vm1, %v5583_v1 }
 0x9bb   :  { %4646 = vmatmul.mubr.f32.gmra.mrb[20].mxu1 %v2822_v54 }
 0x9bc   :  { %5526 = shalt.err (!%p5523_p10)
}
 0x9bd   :  { %s5527_s25 = scalar_lea.hbm %s6160_s8, 256 }
 0x9be   :  { %p5528_p11 = scmp.ne.s32.totalorder %s6160_s8, %s5527_s25  ;;  %p5531_p12 = scmp.lt.u32.totalorder %s5527_s25, %s6160_s8 }
 0x9c0   :  { %p5533_p13 = pnand %p5531_p12, %p5528_p11 }
 0x9c2   :  { %5536 = shalt.err (!%p5533_p13)
}
 0x9c3   :  { %3111 = dma.vmem_to_hbm [thread:$0]  %s3106_s12, 256, %s6160_s8, [#allocation15], %s5573_s17, %s5573_s17, %s5574_s18   ;;  %v3151_v0 = vld [vmem:[#allocation11 + $0xe] ss:$0 sm:$0xff]  ;;  %v3157_v1 = vld [vmem:[#allocation11 + $0x11] ss:$0 sm:$0xff] }
 0x9c4   :  { %v5314_v60 = vadd.f32 %v3157_v1, %v3151_v0  ;;  %s5585_s0 = smov [#allocation13]  }
 0x9c5   :  { %s3093_s9 = sshll.u32 %s5585_s0, 4  ;;  %s3094_s9 = int_to_ptr.vmem [resolvable:$true] %s3093_s9 }
 0x9c6   :  { %s5537_s10 = scalar_lea.vmem %s3094_s9, 384  ;;  %p5542_p1 = scmp.lt.s32.totalorder %s3094_s9, %s3094_s9 }
 0x9c7   :  { %p5538_p0 = scmp.ne.s32.totalorder %s3094_s9, %s5537_s10  ;;  %p5543_p2 = scmp.lt.s32.totalorder %s5537_s10, %s5537_s10 }
 0x9c9   :  { %p5544_p3 = por %p5543_p2, %p5542_p1 }
 0x9cb   :  { %p5545_p4 = pnand %p5544_p3, %p5538_p0 }
 0xa86   :  { %v3057_v56 = vpop.f32.mrb[16].mxu1 }
 0xa87   :  { %v5315_v58 = vadd.f32 %v5314_v60, %v3057_v56  ;;  %v4641_v63 = vpop.f32.mrb[17].mxu1 }
 0xa89   :  { %3083 = vst [vmem:[#allocation13] sm:$0xff] %v5315_v58 }
 0xa8a   :  { %v3062_v61 = vpop.f32.mrb[18].mxu1 }
 0xa8b   :  { %v5317_v6 = vadd.f32 %v5314_v60, %v3062_v61  ;;  %v4644_v2 = vpop.f32.mrb[19].mxu1 }
 0xa8d   :  { %3084 = vst [vmem:[#allocation13 + $0x8] sm:$0xff] %v5317_v6 }
 0xa8e   :  { %v3067_v62 = vpop.f32.mrb[20].mxu1 }
 0xa8f   :  { %v5319_v8 = vadd.f32 %v5314_v60, %v3067_v62  ;;  %v4647_v10 = vpop.f32.mrb[21].mxu1 }
 0xa91   :  { %3085 = vst [vmem:[#allocation13 + $0x10] sm:$0xff] %v5319_v8 }
 0xa92   :  { %5548 = shalt.err (!%p5545_p4)
}
 0xa93   :  { %s5549_s11 = scalar_lea.hbm %s6159_s7, 384 }
 0xa94   :  { %p5550_p5 = scmp.ne.s32.totalorder %s6159_s7, %s5549_s11  ;;  %p5553_p6 = scmp.lt.u32.totalorder %s5549_s11, %s6159_s7 }
 0xa96   :  { %p5555_p7 = pnand %p5553_p6, %p5550_p5 }
 0xa98   :  { %5558 = shalt.err (!%p5555_p7)
}
 0xa99   :  { %3099 = dma.vmem_to_hbm [thread:$0]  %s3094_s9, 384, %s6159_s7, [#allocation4], %s5573_s17, %s5573_s17, %s5574_s18  }
 0xa9a   :  { %5567 = dma.done.wait [#allocation4], 384  }
 0xa9b   :  { %5568 = vsyncadd [#allocation4], 4294966912 }
 0xa9c   :  { %5569 = dma.done.wait [#allocation15], 256  }
 0xa9d   :  { %5570 = vsyncadd [#allocation15], 4294967040 }
 0xa9e   :  { %3118 = vsyncpa [#allocation3], 1 }
 0xa9f   :  { %3119 = vsyncpa [#allocation6], 1 }
 0xaa0   :  { %3120 = vsyncpa [#allocation9], 1 }
 0xaa1   :  { %3121 = vsyncpa [#allocation12], 1 }
 0xaa2   :  { %3122 = vsyncpa [#allocation4], 1 }
 0xaa3   :  { %3123 = vsyncpa [#allocation15], 1 }

</bundles_post_ra>
